<compile_context>
chip_gen: v5e
topology: v5e:2x2
jax: 0.10.0
libtpu: 0.0.40
codegen_flags: <defaults>
</compile_context>

<pallas_src>
import numpy as np
import jax
import jax.numpy as jnp
from jax.experimental import pallas as pl
from jax.experimental.pallas import tpu as pltpu

# ---- problem sizes (small, consistent with an NCHW CNN student) -------------
B, C_IN, H, W = 2, 4, 16, 16
C_OUT = 8
N_CLS = 2
KH = KW = 3
HW = H * W                       # 256
HP, WP = H + 2, W + 2            # 18, 18   zero-padded spatial grid
NIMG = 2 * B                     # student batch + "but"-clause batch, stacked
NTOT = NIMG * HP * WP            # 1296 padded-grid pixels
NTOTP = 1408                     # lane-aligned pixel axis (11*128); extras masked by pool
C_PAD = 8                        # channel axis zero-padded 4 -> 8 (exact, aligned K)
PAD_L = 32                       # left margin so all 9 shifted windows stay in bounds
XLEN = PAD_L + NTOTP + 32        # flattened-pixel length handed to the kernel (1472)
RULE_LAMBDA = 1.0
C_CONST = 1.0


def _make_pool_t() -> np.ndarray:
    """(NIMG, NTOTP): 1/HW on each image's interior pixels, 0 on padding/garbage cols.

    Built once with numpy -> baked into the executable as a literal (no per-call
    HLO ops, ~22 KB constant DMA).  Doubles as the mask that discards the border
    positions where the in-kernel shifted-window conv produces garbage.
    """
    m = np.zeros((NIMG, NIMG, HP, WP), np.float32)
    for i in range(NIMG):
        m[i, i, 1:1 + H, 1:1 + W] = 1.0 / HW
    m = m.reshape(NIMG, NTOT)
    return np.pad(m, ((0, 0), (0, NTOTP - NTOT)))


_POOL_T = _make_pool_t()


# =============================== Pallas kernel ===============================
def _logicnn_kernel(coffif_ref, xflat_ref, w9_ref, bconv_ref, wfc_ref, bfc_ref,
                    pool_t_ref, sprob_ref, teach_ref):
    """Fused student (x and but_xs) + but-rule teacher; single launch, no grid.

    coffif_ref : (B, 1)             VMEM   C * rule_lambda * if_but.float()
    xflat_ref  : (C_PAD, XLEN)      VMEM   channel-major padded-pixel slab (zero margins)
    w9_ref     : (9*C_OUT, C_PAD)   VMEM   per-tap conv weights, channel-padded
    bconv_ref  : (C_OUT, 1)         VMEM
    wfc_ref    : (C_OUT, N_CLS)     VMEM
    bfc_ref    : (1, N_CLS)         VMEM
    pool_t_ref : (NIMG, NTOTP)      VMEM   masked-mean (GAP) matrix
    sprob_ref  : (B, N_CLS)         out    student_prob
    teach_ref  : (B, N_CLS)         out    teacher_prob
    """
    nb = sprob_ref.shape[0]

    # 3x3 same-conv as 9 lane-shifted matmuls, lane-dense (channel, pixel) layout.
    w9 = w9_ref[...]
    acc = jnp.zeros((C_OUT, NTOTP), jnp.float32)
    for t in range(KH * KW):
        kh, kw = divmod(t, KW)
        off = PAD_L + (kh - 1) * WP + (kw - 1)        # static flat shift of this tap
        tap = xflat_ref[:, off:off + NTOTP]           # (C_PAD, NTOTP)
        w_t = w9[t * C_OUT:(t + 1) * C_OUT, :]        # (C_OUT, C_PAD), sublane-aligned
        acc = acc + jnp.dot(w_t, tap, preferred_element_type=jnp.float32)
    conv = jnp.maximum(acc + bconv_ref[...], 0.0)     # bias + ReLU, (C_OUT, NTOTP)

    # Per-image GAP as a masked-mean matmul (interior pixels only): (C_OUT, NIMG).
    pooled_t = jax.lax.dot_general(conv, pool_t_ref[...],
                                   (((1,), (1,)), ((), ())),
                                   preferred_element_type=jnp.float32)

    # FC with NO in-kernel transpose: contract C_OUT (dim 0) of both operands.
    logits = jax.lax.dot_general(pooled_t, wfc_ref[...],
                                 (((0,), (0,)), ((), ())),
                                 preferred_element_type=jnp.float32) + bfc_ref[...]

    m = jnp.max(logits, axis=1, keepdims=True)
    e = jnp.exp(logits - m)
    probs = e * pl.reciprocal(jnp.sum(e, axis=1, keepdims=True), approx=True)

    student = probs[:nb]          # student_net(x)
    logic = probs[nb:]            # student_net(rule_xs[0]) (== but_text_prob, unused)

    # compute_but_rule_constraints + teacher re-normalization (epilogue).
    sigma_pos = logic[:, 1:2]                                   # (B, 1)
    tv_pos = (1.0 + sigma_pos) * 0.5
    tv_neg = (2.0 - sigma_pos) * 0.5
    col = jax.lax.broadcasted_iota(jnp.int32, (nb, N_CLS), 1)
    tv = jnp.where(col == 0, tv_neg, tv_pos)                    # cat([neg, pos], dim=1)
    rule = jnp.exp(-(coffif_ref[...] * (1.0 - tv)))
    teacher = student * rule

    sprob_ref[...] = student
    teach_ref[...] = teacher * pl.reciprocal(
        jnp.sum(teacher, axis=1, keepdims=True), approx=True)


# ================================ JAX wrappers ================================
def preprocess_params(params):
    """One-time weight prep (hoisted out of the per-call path)."""
    # W_t[co, c] = wconv[kh, kw, c, co]; rows ordered tap-major, channel padded to 8.
    w9 = jnp.transpose(params["wconv"], (0, 1, 3, 2)).reshape(KH * KW * C_OUT, C_IN)
    w9 = jnp.pad(w9, ((0, 0), (0, C_PAD - C_IN))).astype(jnp.float32)     # (72, 8)
    return {
        "w9": w9,
        "bconv": params["bconv"].reshape(C_OUT, 1).astype(jnp.float32),
        "wfc": params["wfc"].astype(jnp.float32),
        "bfc": params["bfc"].reshape(1, N_CLS).astype(jnp.float32),
    }


@jax.jit
def _logicnn_impl(prep, x, rule_x, if_but_f, coff):
    nb = x.shape[0]
    # Stack the two student_net batches, zero-pad channels + spatial border, and
    # flatten to the channel-major padded-pixel layout the kernel gathers from.
    x_all = jnp.concatenate([x, rule_x], axis=0).astype(jnp.float32)       # (2B, C, H, W)
    xp = jnp.pad(x_all, ((0, 0), (0, C_PAD - C_IN), (1, 1), (1, 1)))       # (2B, 8, HP, WP)
    xflat = jnp.transpose(xp, (1, 0, 2, 3)).reshape(C_PAD, NTOT)           # (8, 1296)
    xflat = jnp.pad(xflat, ((0, 0), (PAD_L, XLEN - PAD_L - NTOT)))         # (8, XLEN)
    coffif = coff * if_but_f                                               # (B, 1)

    vmem = pl.BlockSpec(memory_space=pltpu.MemorySpace.VMEM)
    return pl.pallas_call(
        _logicnn_kernel,
        out_shape=(jax.ShapeDtypeStruct((nb, N_CLS), jnp.float32),
                   jax.ShapeDtypeStruct((nb, N_CLS), jnp.float32)),
        in_specs=[vmem] * 7,
        out_specs=(vmem, vmem),
    )(coffif, xflat, prep["w9"], prep["bconv"], prep["wfc"], prep["bfc"],
      jnp.asarray(_POOL_T))


def logicnn_forward(prep, x, y, if_rules, rule_xs, epoch,
                    rule_lambda=RULE_LAMBDA, C=C_CONST):
    """JAX/Pallas port of LogiCNN.forward (A-but-B rule only)."""
    coff = jnp.float32(C * rule_lambda)      # runtime value -> no recompile on change
    if_but_f = if_rules[0].astype(jnp.float32).reshape(x.shape[0], 1)
    # but_text_prob = student_net(rule_xs[0]) is computed-but-unused in the PyTorch
    # forward; inside the fused kernel it equals `logic` and is not re-emitted.
    # TODO(synk): `if epoch > 1: pdb.set_trace()` debugger hook has no JAX/Pallas equivalent.
    del y, epoch
    return _logicnn_impl(prep, x, rule_xs[0], if_but_f, coff)


def _reference(params, x, rule_x, if_but_f, coff):
    """Pure-JAX reference of the same forward pass (for correctness checking)."""
    def student_net(inp):
        conv = jax.lax.conv_general_dilated(
            inp.astype(jnp.float32), params["wconv"],
            window_strides=(1, 1), padding=((1, 1), (1, 1)),
            dimension_numbers=("NCHW", "HWIO", "NCHW"))
        conv = jnp.maximum(conv + params["bconv"].reshape(1, C_OUT, 1, 1), 0.0)
        pooled = jnp.mean(conv, axis=(2, 3))
        logits = pooled @ params["wfc"] + params["bfc"]
        return jax.nn.softmax(logits, axis=1)

    student = student_net(x)
    logic = student_net(rule_x)
    sigma = logic[:, 1:2]
    distr = jnp.concatenate([coff * if_but_f * (1.0 - (2.0 - sigma) * 0.5),
                             coff * if_but_f * (1.0 - (1.0 + sigma) * 0.5)], axis=1)
    teacher = student * jnp.exp(-distr)
    return student, teacher / jnp.sum(teacher, axis=1, keepdims=True)


# ==================================== main ====================================
if __name__ == "__main__":
    key = jax.random.PRNGKey(0)
    kcw, kcb, kfw, kfb, kx, kr, ki = jax.random.split(key, 7)

    params = {
        "wconv": 0.1 * jax.random.normal(kcw, (KH, KW, C_IN, C_OUT), jnp.float32),
        "bconv": 0.1 * jax.random.normal(kcb, (C_OUT,), jnp.float32),
        "wfc":   0.1 * jax.random.normal(kfw, (C_OUT, N_CLS), jnp.float32),
        "bfc":   0.1 * jax.random.normal(kfb, (N_CLS,), jnp.float32),
    }
    prep = preprocess_params(params)     # one-time weight prep (hoisted per review)

    x = jax.random.normal(kx, (B, C_IN, H, W), jnp.float32)
    rule_x = jax.random.normal(kr, (B, C_IN, H, W), jnp.float32)          # "but" clause input
    if_but = (jax.random.uniform(ki, (B, 1)) > 0.5).astype(jnp.int32)     # rule indicator
    y = jnp.zeros((B,), jnp.int32)                                        # unused by forward

    student_prob, teacher_prob = logicnn_forward(
        prep, x, y, if_rules=[if_but], rule_xs=[rule_x], epoch=1)
    jax.block_until_ready((student_prob, teacher_prob))

    assert student_prob.shape == (B, N_CLS) and teacher_prob.shape == (B, N_CLS)
    assert bool(jnp.all(jnp.isfinite(student_prob)))
    assert bool(jnp.all(jnp.isfinite(teacher_prob)))
    # probability rows (approx EUP reciprocal in-kernel -> ~1e-3 drift allowed)
    assert bool(jnp.all(jnp.abs(jnp.sum(student_prob, axis=1) - 1.0) < 5e-3))
    assert bool(jnp.all(jnp.abs(jnp.sum(teacher_prob, axis=1) - 1.0) < 5e-3))

    # pure-JAX reference check (tolerance covers the approx reciprocals)
    ref_s, ref_t = _reference(params, x, rule_x, if_but.astype(jnp.float32),
                              jnp.float32(C_CONST * RULE_LAMBDA))
    assert bool(jnp.all(jnp.abs(student_prob - ref_s) < 1e-2))
    assert bool(jnp.all(jnp.abs(teacher_prob - ref_t) < 1e-2))

    print("KERNEL_OK")
</pallas_src>

<mosaic_0001>
module attributes {stable_mosaic.version = 11 : i64} {
  func.func @_logicnn_kernel(%arg0: memref<2x1xf32, #tpu.memory_space<vmem>>, %arg1: memref<8x1472xf32, #tpu.memory_space<vmem>>, %arg2: memref<72x8xf32, #tpu.memory_space<vmem>>, %arg3: memref<8x1xf32, #tpu.memory_space<vmem>>, %arg4: memref<8x2xf32, #tpu.memory_space<vmem>>, %arg5: memref<1x2xf32, #tpu.memory_space<vmem>>, %arg6: memref<4x1408xf32, #tpu.memory_space<vmem>>, %arg7: memref<2x2xf32, #tpu.memory_space<vmem>>, %arg8: memref<2x2xf32, #tpu.memory_space<vmem>>) attributes {dimension_semantics = [], scalar_prefetch = 0 : i64, scratch_operands = 0 : i64, tpu.core_type = #tpu.core_type<tc>} {
    %c0 = arith.constant 0 : index
    %c0_0 = arith.constant 0 : index
    %0 = vector.load %arg2[%c0, %c0_0] : memref<72x8xf32, #tpu.memory_space<vmem>>, vector<72x8xf32>
    %cst = arith.constant 0.000000e+00 : f32
    %1 = vector.broadcast %cst : f32 to vector<8x1408xf32>
    %c0_1 = arith.constant 0 : index
    %c13 = arith.constant 13 : index
    %2 = vector.load %arg1[%c0_1, %c13] : memref<8x1472xf32, #tpu.memory_space<vmem>>, vector<8x1408xf32>
    %3 = vector.extract_strided_slice %0 {offsets = [0, 0], sizes = [8, 8], strides = [1, 1]} : vector<72x8xf32> to vector<8x8xf32>
    %cst_2 = arith.constant dense<0.000000e+00> : vector<8x1408xf32>
    %4 = tpu.matmul %3, %2, %cst_2 {dimension_numbers = #tpu.dot_dimension_numbers<[1], [0], [0], [1], [0, 0, 1, 1], [], []>} : vector<8x8xf32>, vector<8x1408xf32>, vector<8x1408xf32> -> vector<8x1408xf32>
    %5 = arith.addf %1, %4 : vector<8x1408xf32>
    %c0_3 = arith.constant 0 : index
    %c14 = arith.constant 14 : index
    %6 = vector.load %arg1[%c0_3, %c14] : memref<8x1472xf32, #tpu.memory_space<vmem>>, vector<8x1408xf32>
    %7 = vector.extract_strided_slice %0 {offsets = [8, 0], sizes = [8, 8], strides = [1, 1]} : vector<72x8xf32> to vector<8x8xf32>
    %cst_4 = arith.constant dense<0.000000e+00> : vector<8x1408xf32>
    %8 = tpu.matmul %7, %6, %cst_4 {dimension_numbers = #tpu.dot_dimension_numbers<[1], [0], [0], [1], [0, 0, 1, 1], [], []>} : vector<8x8xf32>, vector<8x1408xf32>, vector<8x1408xf32> -> vector<8x1408xf32>
    %9 = arith.addf %5, %8 : vector<8x1408xf32>
    %c0_5 = arith.constant 0 : index
    %c15 = arith.constant 15 : index
    %10 = vector.load %arg1[%c0_5, %c15] : memref<8x1472xf32, #tpu.memory_space<vmem>>, vector<8x1408xf32>
    %11 = vector.extract_strided_slice %0 {offsets = [16, 0], sizes = [8, 8], strides = [1, 1]} : vector<72x8xf32> to vector<8x8xf32>
    %cst_6 = arith.constant dense<0.000000e+00> : vector<8x1408xf32>
    %12 = tpu.matmul %11, %10, %cst_6 {dimension_numbers = #tpu.dot_dimension_numbers<[1], [0], [0], [1], [0, 0, 1, 1], [], []>} : vector<8x8xf32>, vector<8x1408xf32>, vector<8x1408xf32> -> vector<8x1408xf32>
    %13 = arith.addf %9, %12 : vector<8x1408xf32>
    %c0_7 = arith.constant 0 : index
    %c31 = arith.constant 31 : index
    %14 = vector.load %arg1[%c0_7, %c31] : memref<8x1472xf32, #tpu.memory_space<vmem>>, vector<8x1408xf32>
    %15 = vector.extract_strided_slice %0 {offsets = [24, 0], sizes = [8, 8], strides = [1, 1]} : vector<72x8xf32> to vector<8x8xf32>
    %cst_8 = arith.constant dense<0.000000e+00> : vector<8x1408xf32>
    %16 = tpu.matmul %15, %14, %cst_8 {dimension_numbers = #tpu.dot_dimension_numbers<[1], [0], [0], [1], [0, 0, 1, 1], [], []>} : vector<8x8xf32>, vector<8x1408xf32>, vector<8x1408xf32> -> vector<8x1408xf32>
    %17 = arith.addf %13, %16 : vector<8x1408xf32>
    %c0_9 = arith.constant 0 : index
    %c32 = arith.constant 32 : index
    %18 = vector.load %arg1[%c0_9, %c32] : memref<8x1472xf32, #tpu.memory_space<vmem>>, vector<8x1408xf32>
    %19 = vector.extract_strided_slice %0 {offsets = [32, 0], sizes = [8, 8], strides = [1, 1]} : vector<72x8xf32> to vector<8x8xf32>
    %cst_10 = arith.constant dense<0.000000e+00> : vector<8x1408xf32>
    %20 = tpu.matmul %19, %18, %cst_10 {dimension_numbers = #tpu.dot_dimension_numbers<[1], [0], [0], [1], [0, 0, 1, 1], [], []>} : vector<8x8xf32>, vector<8x1408xf32>, vector<8x1408xf32> -> vector<8x1408xf32>
    %21 = arith.addf %17, %20 : vector<8x1408xf32>
    %c0_11 = arith.constant 0 : index
    %c33 = arith.constant 33 : index
    %22 = vector.load %arg1[%c0_11, %c33] : memref<8x1472xf32, #tpu.memory_space<vmem>>, vector<8x1408xf32>
    %23 = vector.extract_strided_slice %0 {offsets = [40, 0], sizes = [8, 8], strides = [1, 1]} : vector<72x8xf32> to vector<8x8xf32>
    %cst_12 = arith.constant dense<0.000000e+00> : vector<8x1408xf32>
    %24 = tpu.matmul %23, %22, %cst_12 {dimension_numbers = #tpu.dot_dimension_numbers<[1], [0], [0], [1], [0, 0, 1, 1], [], []>} : vector<8x8xf32>, vector<8x1408xf32>, vector<8x1408xf32> -> vector<8x1408xf32>
    %25 = arith.addf %21, %24 : vector<8x1408xf32>
    %c0_13 = arith.constant 0 : index
    %c49 = arith.constant 49 : index
    %26 = vector.load %arg1[%c0_13, %c49] : memref<8x1472xf32, #tpu.memory_space<vmem>>, vector<8x1408xf32>
    %27 = vector.extract_strided_slice %0 {offsets = [48, 0], sizes = [8, 8], strides = [1, 1]} : vector<72x8xf32> to vector<8x8xf32>
    %cst_14 = arith.constant dense<0.000000e+00> : vector<8x1408xf32>
    %28 = tpu.matmul %27, %26, %cst_14 {dimension_numbers = #tpu.dot_dimension_numbers<[1], [0], [0], [1], [0, 0, 1, 1], [], []>} : vector<8x8xf32>, vector<8x1408xf32>, vector<8x1408xf32> -> vector<8x1408xf32>
    %29 = arith.addf %25, %28 : vector<8x1408xf32>
    %c0_15 = arith.constant 0 : index
    %c50 = arith.constant 50 : index
    %30 = vector.load %arg1[%c0_15, %c50] : memref<8x1472xf32, #tpu.memory_space<vmem>>, vector<8x1408xf32>
    %31 = vector.extract_strided_slice %0 {offsets = [56, 0], sizes = [8, 8], strides = [1, 1]} : vector<72x8xf32> to vector<8x8xf32>
    %cst_16 = arith.constant dense<0.000000e+00> : vector<8x1408xf32>
    %32 = tpu.matmul %31, %30, %cst_16 {dimension_numbers = #tpu.dot_dimension_numbers<[1], [0], [0], [1], [0, 0, 1, 1], [], []>} : vector<8x8xf32>, vector<8x1408xf32>, vector<8x1408xf32> -> vector<8x1408xf32>
    %33 = arith.addf %29, %32 : vector<8x1408xf32>
    %c0_17 = arith.constant 0 : index
    %c51 = arith.constant 51 : index
    %34 = vector.load %arg1[%c0_17, %c51] : memref<8x1472xf32, #tpu.memory_space<vmem>>, vector<8x1408xf32>
    %35 = vector.extract_strided_slice %0 {offsets = [64, 0], sizes = [8, 8], strides = [1, 1]} : vector<72x8xf32> to vector<8x8xf32>
    %cst_18 = arith.constant dense<0.000000e+00> : vector<8x1408xf32>
    %36 = tpu.matmul %35, %34, %cst_18 {dimension_numbers = #tpu.dot_dimension_numbers<[1], [0], [0], [1], [0, 0, 1, 1], [], []>} : vector<8x8xf32>, vector<8x1408xf32>, vector<8x1408xf32> -> vector<8x1408xf32>
    %37 = arith.addf %33, %36 : vector<8x1408xf32>
    %c0_19 = arith.constant 0 : index
    %c0_20 = arith.constant 0 : index
    %38 = vector.load %arg3[%c0_19, %c0_20] : memref<8x1xf32, #tpu.memory_space<vmem>>, vector<8x1xf32>
    %39 = vector.broadcast %38 : vector<8x1xf32> to vector<8x1408xf32>
    %40 = arith.addf %37, %39 : vector<8x1408xf32>
    %cst_21 = arith.constant 0.000000e+00 : f32
    %41 = vector.broadcast %cst_21 : f32 to vector<8x1408xf32>
    %42 = arith.maximumf %40, %41 : vector<8x1408xf32>
    %c0_22 = arith.constant 0 : index
    %c0_23 = arith.constant 0 : index
    %43 = vector.load %arg6[%c0_22, %c0_23] : memref<4x1408xf32, #tpu.memory_space<vmem>>, vector<4x1408xf32>
    %cst_24 = arith.constant dense<0.000000e+00> : vector<8x4xf32>
    %44 = tpu.matmul %42, %43, %cst_24 {dimension_numbers = #tpu.dot_dimension_numbers<[1], [1], [0], [0], [0, 0, 1, 0], [], []>} : vector<8x1408xf32>, vector<4x1408xf32>, vector<8x4xf32> -> vector<8x4xf32>
    %c0_25 = arith.constant 0 : index
    %c0_26 = arith.constant 0 : index
    %45 = vector.load %arg4[%c0_25, %c0_26] : memref<8x2xf32, #tpu.memory_space<vmem>>, vector<8x2xf32>
    %cst_27 = arith.constant dense<0.000000e+00> : vector<4x2xf32>
    %46 = tpu.matmul %44, %45, %cst_27 {dimension_numbers = #tpu.dot_dimension_numbers<[0], [0], [1], [1], [0, 1, 1, 1], [], []>} : vector<8x4xf32>, vector<8x2xf32>, vector<4x2xf32> -> vector<4x2xf32>
    %c0_28 = arith.constant 0 : index
    %c0_29 = arith.constant 0 : index
    %47 = vector.load %arg5[%c0_28, %c0_29] : memref<1x2xf32, #tpu.memory_space<vmem>>, vector<1x2xf32>
    %48 = vector.broadcast %47 : vector<1x2xf32> to vector<4x2xf32>
    %49 = arith.addf %46, %48 : vector<4x2xf32>
    %cst_30 = arith.constant dense<0xFF800000> : vector<4xf32>
    %50 = vector.multi_reduction <maximumf>, %49, %cst_30 [1] : vector<4x2xf32> to vector<4xf32>
    %51 = vector.shape_cast %50 : vector<4xf32> to vector<4x1xf32>
    %52 = vector.broadcast %51 : vector<4x1xf32> to vector<4x2xf32>
    %53 = arith.subf %49, %52 : vector<4x2xf32>
    %54 = math.exp %53 : vector<4x2xf32>
    %cst_31 = arith.constant dense<0.000000e+00> : vector<4xf32>
    %55 = vector.multi_reduction <add>, %54, %cst_31 [1] : vector<4x2xf32> to vector<4xf32>
    %56 = vector.shape_cast %55 : vector<4xf32> to vector<4x1xf32>
    %57 = tpu.reciprocal %56 {approx = true} : vector<4x1xf32> -> vector<4x1xf32>
    %58 = vector.broadcast %57 : vector<4x1xf32> to vector<4x2xf32>
    %59 = arith.mulf %54, %58 : vector<4x2xf32>
    %60 = vector.extract_strided_slice %59 {offsets = [0, 0], sizes = [2, 2], strides = [1, 1]} : vector<4x2xf32> to vector<2x2xf32>
    %61 = vector.extract_strided_slice %59 {offsets = [2, 0], sizes = [2, 2], strides = [1, 1]} : vector<4x2xf32> to vector<2x2xf32>
    %62 = vector.extract_strided_slice %61 {offsets = [0, 1], sizes = [2, 1], strides = [1, 1]} : vector<2x2xf32> to vector<2x1xf32>
    %cst_32 = arith.constant 1.000000e+00 : f32
    %63 = vector.broadcast %cst_32 : f32 to vector<2x1xf32>
    %64 = arith.addf %63, %62 : vector<2x1xf32>
    %cst_33 = arith.constant 5.000000e-01 : f32
    %65 = vector.broadcast %cst_33 : f32 to vector<2x1xf32>
    %66 = arith.mulf %64, %65 : vector<2x1xf32>
    %cst_34 = arith.constant 2.000000e+00 : f32
    %67 = vector.broadcast %cst_34 : f32 to vector<2x1xf32>
    %68 = arith.subf %67, %62 : vector<2x1xf32>
    %cst_35 = arith.constant 5.000000e-01 : f32
    %69 = vector.broadcast %cst_35 : f32 to vector<2x1xf32>
    %70 = arith.mulf %68, %69 : vector<2x1xf32>
    %71 = tpu.iota {dimensions = array<i32: 1>} : vector<2x2xi32>
    %c0_i32 = arith.constant 0 : i32
    %72 = vector.broadcast %c0_i32 : i32 to vector<2x2xi32>
    %73 = arith.cmpi eq, %71, %72 : vector<2x2xi32>
    %74 = vector.shape_cast %70 : vector<2x1xf32> to vector<2x1xf32>
    %75 = vector.broadcast %74 : vector<2x1xf32> to vector<2x2xf32>
    %76 = vector.shape_cast %66 : vector<2x1xf32> to vector<2x1xf32>
    %77 = vector.broadcast %76 : vector<2x1xf32> to vector<2x2xf32>
    %78 = arith.select %73, %75, %77 : vector<2x2xi1>, vector<2x2xf32>
    %c0_36 = arith.constant 0 : index
    %c0_37 = arith.constant 0 : index
    %79 = vector.load %arg0[%c0_36, %c0_37] : memref<2x1xf32, #tpu.memory_space<vmem>>, vector<2x1xf32>
    %cst_38 = arith.constant 1.000000e+00 : f32
    %80 = vector.broadcast %cst_38 : f32 to vector<2x2xf32>
    %81 = arith.subf %80, %78 : vector<2x2xf32>
    %82 = vector.broadcast %79 : vector<2x1xf32> to vector<2x2xf32>
    %83 = arith.mulf %82, %81 : vector<2x2xf32>
    %cst_39 = arith.constant 0.000000e+00 : f32
    %84 = vector.broadcast %cst_39 : f32 to vector<2x2xf32>
    %85 = arith.subf %84, %83 : vector<2x2xf32>
    %86 = math.exp %85 : vector<2x2xf32>
    %87 = arith.mulf %60, %86 : vector<2x2xf32>
    %c0_40 = arith.constant 0 : index
    %c0_41 = arith.constant 0 : index
    %88 = vector.load %arg7[%c0_40, %c0_41] : memref<2x2xf32, #tpu.memory_space<vmem>>, vector<2x2xf32>
    tpu.vector_store %arg7[%c0_40, %c0_41], %60 {strides = array<i32>} : memref<2x2xf32, #tpu.memory_space<vmem>>, vector<2x2xf32>,
    %cst_42 = arith.constant dense<0.000000e+00> : vector<2xf32>
    %89 = vector.multi_reduction <add>, %87, %cst_42 [1] : vector<2x2xf32> to vector<2xf32>
    %90 = vector.shape_cast %89 : vector<2xf32> to vector<2x1xf32>
    %91 = tpu.reciprocal %90 {approx = true} : vector<2x1xf32> -> vector<2x1xf32>
    %92 = vector.broadcast %91 : vector<2x1xf32> to vector<2x2xf32>
    %93 = arith.mulf %87, %92 : vector<2x2xf32>
    %c0_43 = arith.constant 0 : index
    %c0_44 = arith.constant 0 : index
    %94 = vector.load %arg8[%c0_43, %c0_44] : memref<2x2xf32, #tpu.memory_space<vmem>>, vector<2x2xf32>
    tpu.vector_store %arg8[%c0_43, %c0_44], %93 {strides = array<i32>} : memref<2x2xf32, #tpu.memory_space<vmem>>, vector<2x2xf32>,
    return
  }
}

</mosaic_0001>

<bundles_post_ra>
// kernel: _logicnn_impl.1
= control target key start
LH: loop header
LB: loop body
LE: loop exit
PB: predicated region body
PF: predicated region fallthrough
CT: control target
= control target key end

     0   :  { %14 = vsyncpa [#allocation3], 0  ;;  %s3455_s13 = smov 114   ;;  %s4084_s0 = inlined_call_operand.vmem [shape: f32[2,1], index: 0, kind: input, shape index: {}]   ;;  %s4085_s1 = inlined_call_operand.vmem [shape: f32[8,1472], index: 1, kind: input, shape index: {}]   ;;  %s4086_s2 = inlined_call_operand.vmem [shape: f32[72,8], index: 2, kind: input, shape index: {}]   ;;  %s4087_s3 = inlined_call_operand.vmem [shape: f32[8,1], index: 3, kind: input, shape index: {}]   ;;  %s4088_s4 = inlined_call_operand.vmem [shape: f32[8,2], index: 4, kind: input, shape index: {}]   ;;  %s4089_s5 = inlined_call_operand.vmem [shape: f32[1,2], index: 5, kind: input, shape index: {}]   ;;  %s4090_s6 = inlined_call_operand.vmem [shape: f32[4,1408], index: 6, kind: input, shape index: {}]   ;;  %s4091_s7 = inlined_call_operand.hbm [shape: f32[2,2], index: 7, kind: output, shape index: {0}]   ;;  %s4092_s8 = inlined_call_operand.hbm [shape: f32[2,2], index: 8, kind: output, shape index: {1}]  }
   0x1   :  { %v41_v0 = vld [vmem:[%s4085_s1 + $0x10] sm:$0xff]  ;;  %v44_v1 = vld [vmem:[%s4085_s1 + $0x28] sm:$0xff]  ;;  %v39_v2 = vld [vmem:[%s4085_s1] sm:$0xff] }
   0x2   :  { %v3522_v3 = vpack.i.bf16 %v44_v1, %v41_v0  ;;  %v40_v4 = vld [vmem:[%s4085_s1 + $0x8] sm:$0xff]  ;;  %v46_v6 = vld [vmem:[%s4085_s1 + $0x38] sm:$0xff]  ;;  %v45_v7 = vld [vmem:[%s4085_s1 + $0x30] sm:$0xff] }
   0x3   :  { %v3527_v5 = vpack.i.bf16 %v40_v4, %v39_v2  ;;  %v48_v8 = vld [vmem:[%s4085_s1 + $0x48] sm:$0xff]  ;;  %v47_v9 = vld [vmem:[%s4085_s1 + $0x40] sm:$0xff] }
   0x4   :  { %3132 = vrot.lane.b32.xlu1 %v3522_v3, %s3455_s13  ;;  %v3543_v10 = vpack.i.bf16 %v48_v8, %v45_v7 }
   0x5   :  { %3122 = vrot.lane.b32.xlu0 %v3527_v5, %s3455_s13 }
   0x6   :  { %15 = vsyncpa [#allocation5], 0  ;;  %v42_v11 = vld [vmem:[%s4085_s1 + $0x18] sm:$0xff]  ;;  %v43_v12 = vld [vmem:[%s4085_s1 + $0x20] sm:$0xff]  ;;  %3142 = vrot.lane.b32.xlu2 %v3543_v10, %s3455_s13  ;;  %v3552_v13 = vpack.i.bf16 %v47_v9, %v46_v6  ;;  %s3456_s30 = smov 115   ;;  %v3171_v20 = vpack.i.bf16 %v46_v6, %v48_v8  ;;  %v3166_v21 = vpack.i.bf16 %v47_v9, %v45_v7  ;;  %v3181_v23 = vpack.i.bf16 %v41_v0, %v40_v4  ;;  %s3458_s9 = smov 97  }
   0x7   :  { %v3554_v14 = vpack.i.bf16 %v43_v12, %v42_v11  ;;  %v49_v15 = vld [vmem:[%s4085_s1 + $0x50] sm:$0xff]  ;;  %v50_v16 = vld [vmem:[%s4085_s1 + $0x58] sm:$0xff]  ;;  %v3156_v17 = vpack.i.bf16 %v43_v12, %v41_v0  ;;  %v3161_v19 = vpack.i.bf16 %v42_v11, %v44_v1  ;;  %v3186_v22 = vpack.i.bf16 %v42_v11, %v39_v2  ;;  %s3457_s1 = smov 113   ;;  %s3459_s10 = smov 96   ;;  %v3605_v43 = vld [vmem:[%s4086_s2 + $0x8] sm:$0xff] }
   0x8   :  { %v3565_v18 = vpack.i.bf16 %v50_v16, %v49_v15  ;;  %v3569_v24 = vpack.i.bf16 %v45_v7, %v44_v1  ;;  %v3201_v25 = vpack.i.bf16 %v49_v15, %v48_v8  ;;  %v3196_v26 = vpack.i.bf16 %v46_v6, %v43_v12  ;;  %s3460_s11 = smov 95   ;;  %s3461_s12 = smov 79  }
   0x9   :  { %v3572_v27 = vpack.i.bf16 %v50_v16, %v47_v9  ;;  %v3216_v28 = vpack.i.bf16 %v39_v2, %v40_v4  ;;  %v3211_v29 = vpack.i.bf16 %v42_v11, %v41_v0  ;;  %v3575_v30 = vpack.i.bf16 %v45_v7, %v43_v12  ;;  %s3462_s15 = smov 78   ;;  %s3463_s16 = smov 77  }
   0xa   :  { %v3578_v31 = vpack.i.bf16 %v49_v15, %v47_v9  ;;  %v3580_v32 = vpack.i.bf16 %v44_v1, %v46_v6  ;;  %v3582_v33 = vpack.i.bf16 %v48_v8, %v50_v16  ;;  %vm87_vm0 = vcmask 932864   ;;  %s2982_s26 = sshll.u32 %s4091_s7, 4  ;;  %s3466_s27 = smov [#allocation2]   ;;  %s2983_s26 = int_to_ptr.hbm [resolvable:$true] %s2982_s26 }
   0xb   :  { %vm110_vm1 = vcmask 64512   ;;  %vm358_vm2 = vcmask 941056   ;;  %vm628_vm3 = vcmask 924672   ;;  %vm909_vm4 = vcmask 793600   ;;  %s2980_s28 = sshll.u32 %s3466_s27, 4  ;;  %s3467_s29 = smov [#allocation4]   ;;  %s2981_s28 = int_to_ptr.vmem [resolvable:$true] %s2980_s28 }
   0xc   :  { %3137 = vrot.lane.b32.xlu1 %v3552_v13, %s3455_s13  ;;  %vm1190_vm5 = vcmask 785408   ;;  %vm1471_vm6 = vcmask 777216   ;;  %vm1752_vm7 = vcmask 646144   ;;  %vm2033_vm8 = vcmask 637952  }
   0xd   :  { %3127 = vrot.lane.b32.xlu0 %v3554_v14, %s3455_s13  ;;  %vm2314_vm9 = vcmask 629760   ;;  %vm2922_vm10 = vcmask 11264   ;;  %vm2967_vm11 = vcmask 9216  }
   0xe   :  { %3147 = vrot.lane.b32.xlu2 %v3527_v5, %s3456_s30 }
  0x14   :  { %3157 = vrot.lane.b32.xlu1 %v3156_v17, %s3456_s30 }
  0x15   :  { %3152 = vrot.lane.b32.xlu0 %v3565_v18, %s3455_s13 }
  0x16   :  { %3162 = vrot.lane.b32.xlu2 %v3161_v19, %s3456_s30 }
  0x1c   :  { %3172 = vrot.lane.b32.xlu1 %v3171_v20, %s3456_s30 }
  0x1d   :  { %3167 = vrot.lane.b32.xlu0 %v3166_v21, %s3456_s30 }
  0x1e   :  { %3177 = vrot.lane.b32.xlu2 %v3565_v18, %s3456_s30  ;;  %s2991_s30 = sshll.u32 %s3467_s29, 4  ;;  %s2992_s30 = int_to_ptr.vmem [resolvable:$true] %s2991_s30 }
  0x24   :  { %3187 = vrot.lane.b32.xlu1 %v3186_v22, %s3457_s1 }
  0x25   :  { %3182 = vrot.lane.b32.xlu0 %v3181_v23, %s3457_s1 }
  0x26   :  { %3192 = vrot.lane.b32.xlu2 %v3569_v24, %s3457_s1 }
  0x2c   :  { %3202 = vrot.lane.b32.xlu1 %v3201_v25, %s3457_s1 }
  0x2d   :  { %3197 = vrot.lane.b32.xlu0 %v3196_v26, %s3457_s1 }
  0x2e   :  { %3207 = vrot.lane.b32.xlu2 %v3572_v27, %s3457_s1 }
  0x34   :  { %3217 = vrot.lane.b32.xlu1 %v3216_v28, %s3458_s9 }
  0x35   :  { %3212 = vrot.lane.b32.xlu0 %v3211_v29, %s3458_s9 }
  0x36   :  { %3222 = vrot.lane.b32.xlu2 %v3575_v30, %s3458_s9 }
  0x3c   :  { %3232 = vrot.lane.b32.xlu1 %v3578_v31, %s3458_s9 }
  0x3d   :  { %3227 = vrot.lane.b32.xlu0 %v3580_v32, %s3458_s9 }
  0x3e   :  { %3237 = vrot.lane.b32.xlu2 %v3582_v33, %s3458_s9 }
  0x44   :  { %3247 = vrot.lane.b32.xlu1 %v3554_v14, %s3459_s10 }
  0x45   :  { %3242 = vrot.lane.b32.xlu0 %v3527_v5, %s3459_s10 }
  0x46   :  { %3252 = vrot.lane.b32.xlu2 %v3522_v3, %s3459_s10 }
  0x4c   :  { %3262 = vrot.lane.b32.xlu1 %v3543_v10, %s3459_s10 }
  0x4d   :  { %3257 = vrot.lane.b32.xlu0 %v3552_v13, %s3459_s10 }
  0x4e   :  { %3267 = vrot.lane.b32.xlu2 %v3527_v5, %s3460_s11 }
  0x54   :  { %3277 = vrot.lane.b32.xlu1 %v3156_v17, %s3460_s11 }
  0x55   :  { %3272 = vrot.lane.b32.xlu0 %v3565_v18, %s3459_s10 }
  0x56   :  { %3282 = vrot.lane.b32.xlu2 %v3161_v19, %s3460_s11 }
  0x5c   :  { %3292 = vrot.lane.b32.xlu1 %v3171_v20, %s3460_s11 }
  0x5d   :  { %3287 = vrot.lane.b32.xlu0 %v3166_v21, %s3460_s11 }
  0x5e   :  { %3297 = vrot.lane.b32.xlu2 %v3565_v18, %s3460_s11 }
  0x60   :  { %v3597_v34 = vpop.permute.xlu2 %3142 }
  0x61   :  { %v3144_v36 = vunpack.i.l.bf16 %v3597_v34  ;;  %v3145_v50 = vunpack.i.h.bf16 %v3597_v34 }
  0x64   :  { %3307 = vrot.lane.b32.xlu1 %v3186_v22, %s3461_s12 }
  0x65   :  { %3302 = vrot.lane.b32.xlu0 %v3181_v23, %s3461_s12 }
  0x66   :  { %3312 = vrot.lane.b32.xlu2 %v3569_v24, %s3461_s12 }
  0x68   :  { %v3148_v42 = vpop.permute.xlu2 %3147 }
  0x69   :  { %v3150_v54 = vunpack.i.h.bf16 %v3148_v42  ;;  %v3149_v55 = vunpack.i.l.bf16 %v3148_v42 }
  0x6b   :  { %v359_v63 = vsel %vm358_vm2, %v3149_v55, %v3150_v54 }
  0x6c   :  { %3322 = vrot.lane.b32.xlu1 %v3201_v25, %s3461_s12 }
  0x6d   :  { %3317 = vrot.lane.b32.xlu0 %v3196_v26, %s3461_s12 }
  0x6e   :  { %3327 = vrot.lane.b32.xlu2 %v3572_v27, %s3461_s12 }
  0x70   :  { %v3163_v59 = vpop.permute.xlu2 %3162 }
  0x71   :  { %v3165_v0 = vunpack.i.h.bf16 %v3163_v59  ;;  %v3164_v9 = vunpack.i.l.bf16 %v3163_v59 }
  0x74   :  { %3337 = vrot.lane.b32.xlu1 %v3216_v28, %s3462_s15 }
  0x75   :  { %3332 = vrot.lane.b32.xlu0 %v3211_v29, %s3462_s15  ;;  %v30_v29 = vld [vmem:[%s4086_s2] sm:$0xff] }
  0x76   :  { %v3133_v35 = vpop.permute.xlu1 %3132  ;;  %3342 = vrot.lane.b32.xlu2 %v3575_v30, %s3462_s15 }
  0x77   :  { %v3135_v37 = vunpack.i.h.bf16 %v3133_v35  ;;  %v3134_v38 = vunpack.i.l.bf16 %v3133_v35  ;;  %v3123_v39 = vpop.permute.xlu0 %3122 }
  0x78   :  { %v3125_v40 = vunpack.i.h.bf16 %v3123_v39  ;;  %v3124_v41 = vunpack.i.l.bf16 %v3123_v39  ;;  %v3178_v17 = vpop.permute.xlu2 %3177 }
  0x79   :  { %v93_v46 = vsel %vm87_vm0, %v3135_v37, %v3144_v36  ;;  %v3179_v27 = vunpack.i.l.bf16 %v3178_v17  ;;  %v3180_v28 = vunpack.i.h.bf16 %v3178_v17 }
  0x7a   :  { %v88_v44 = vsel %vm87_vm0, %v3124_v41, %v3125_v40  ;;  %v89_v45 = vsel %vm87_vm0, %v3125_v40, %v3134_v38 }
  0x7b   :  { %129 = vmatpush.msra.mxu0 %v88_v44  ;;  %149 = vmatpush.msra.mxu1 %v89_v45 }
  0x7c   :  { %3007 = vmatmul.msk.f32.vlgmr.msra.gmra.mxu0 %vm110_vm1, %v3605_v43  ;;  %3008 = vmatmul.msk.f32.vlgmr.msra.gmra.mxu1 %vm110_vm1, %v3605_v43 }
  0x7d   :  { %229 = vmatpush.msrb.mxu1 %v93_v46  ;;  %3347 = vrot.lane.b32.xlu0 %v3580_v32, %s3462_s15 }
  0x7e   :  { %v3138_v47 = vpop.permute.xlu1 %3137  ;;  %3352 = vrot.lane.b32.xlu1 %v3578_v31, %s3462_s15  ;;  %3357 = vrot.lane.b32.xlu2 %v3582_v33, %s3462_s15 }
  0x7f   :  { %v3128_v48 = vpop.permute.xlu0 %3127  ;;  %v3139_v49 = vunpack.i.l.bf16 %v3138_v47  ;;  %v3140_v53 = vunpack.i.h.bf16 %v3138_v47 }
  0x80   :  { %v3130_v51 = vunpack.i.h.bf16 %v3128_v48  ;;  %v3129_v52 = vunpack.i.l.bf16 %v3128_v48 }
  0x81   :  { %v94_v60 = vsel %vm87_vm0, %v3144_v36, %v3139_v49  ;;  %v95_v61 = vsel %vm87_vm0, %v3139_v49, %v3140_v53  ;;  %v96_v62 = vsel %vm87_vm0, %v3140_v53, %v3145_v50 }
  0x82   :  { %v90_v56 = vsel %vm87_vm0, %v3134_v38, %v3129_v52  ;;  %v91_v57 = vsel %vm87_vm0, %v3129_v52, %v3130_v51  ;;  %v92_v58 = vsel %vm87_vm0, %v3130_v51, %v3135_v37  ;;  %v369_v37 = vsel %vm358_vm2, %v3179_v27, %v3180_v28 }
  0x83   :  { %169 = vmatpush.msra.mxu2 %v90_v56  ;;  %189 = vmatpush.msra.mxu3 %v91_v57 }
  0x84   :  { %209 = vmatpush.msrb.mxu0 %v92_v58  ;;  %3009 = vmatmul.msk.f32.vlgmr.msra.gmra.mxu2 %vm110_vm1, %v3605_v43 }
  0x85   :  { %3010 = vmatmul.msk.f32.vlgmr.msra.gmra.mxu3 %vm110_vm1, %v3605_v43  ;;  %3011 = vmatmul.msk.f32.vlgmr.msrb.gmra.mxu0 %vm110_vm1, %v3605_v43 }
  0x86   :  { %3012 = vmatmul.msk.f32.vlgmr.msrb.gmra.mxu1 %vm110_vm1, %v3605_v43  ;;  %249 = vmatpush.msrb.mxu2 %v94_v60  ;;  %v3158_v1 = vpop.permute.xlu1 %3157 }
  0x87   :  { %269 = vmatpush.msrb.mxu3 %v95_v61  ;;  %289 = vmatpush.msra.mxu0 %v96_v62  ;;  %v3153_v2 = vpop.permute.xlu0 %3152  ;;  %v3160_v4 = vunpack.i.h.bf16 %v3158_v1  ;;  %v3159_v6 = vunpack.i.l.bf16 %v3158_v1  ;;  %v32_v61 = vld [vmem:[%s4086_s2 + $0x10] sm:$0xff] }
  0x88   :  { %v3155_v7 = vunpack.i.h.bf16 %v3153_v2  ;;  %v3154_v8 = vunpack.i.l.bf16 %v3153_v2  ;;  %3367 = vrot.lane.b32.xlu1 %v3554_v14, %s3463_s16  ;;  %v3193_v14 = vpop.permute.xlu2 %3192  ;;  %3362 = vrot.lane.b32.xlu0 %v3527_v5, %s3463_s16 }
  0x89   :  { %399 = vmatpush.msra.mxu3 %v359_v63  ;;  %v360_v11 = vsel %vm358_vm2, %v3150_v54, %v3159_v6  ;;  %v361_v12 = vsel %vm358_vm2, %v3159_v6, %v3165_v0  ;;  %v362_v19 = vsel %vm358_vm2, %v3165_v0, %v3160_v4  ;;  %v363_v20 = vsel %vm358_vm2, %v3160_v4, %v3164_v9 }
  0x8a   :  { %v97_v15 = vsel %vm87_vm0, %v3145_v50, %v3154_v8  ;;  %419 = vmatpush.msrb.mxu0 %v360_v11  ;;  %v98_v16 = vsel %vm87_vm0, %v3154_v8, %v3155_v7  ;;  %v3194_v47 = vunpack.i.l.bf16 %v3193_v14  ;;  %3372 = vrot.lane.b32.xlu2 %v3522_v3, %s3463_s16 }
  0x8b   :  { %309 = vmatpush.msra.mxu1 %v97_v15  ;;  %329 = vmatpush.msra.mxu2 %v98_v16 }
  0x8c   :  { %3013 = vmatmul.msk.f32.vlgmr.msrb.gmra.mxu2 %vm110_vm1, %v3605_v43 }
  0x8d   :  { %439 = vmatpush.msrb.mxu1 %v361_v12  ;;  %3014 = vmatmul.msk.f32.vlgmr.msrb.gmra.mxu3 %vm110_vm1, %v3605_v43 }
  0x8e   :  { %3015 = vmatmul.msk.f32.vlgmr.msra.gmra.mxu0 %vm110_vm1, %v3605_v43  ;;  %3016 = vmatmul.msk.f32.vlgmr.msra.gmra.mxu1 %vm110_vm1, %v3605_v43  ;;  %v3173_v21 = vpop.permute.xlu1 %3172 }
  0x8f   :  { %459 = vmatpush.msrb.mxu2 %v362_v19  ;;  %v3168_v22 = vpop.permute.xlu0 %3167  ;;  %479 = vmatpush.msrb.mxu3 %v363_v20  ;;  %v3175_v23 = vunpack.i.h.bf16 %v3173_v21  ;;  %v3174_v26 = vunpack.i.l.bf16 %v3173_v21 }
  0x90   :  { %v3170_v24 = vunpack.i.h.bf16 %v3168_v22  ;;  %v3169_v25 = vunpack.i.l.bf16 %v3168_v22  ;;  %3382 = vrot.lane.b32.xlu1 %v3543_v10, %s3463_s16  ;;  %v3208_v5 = vpop.permute.xlu2 %3207  ;;  %v3195_v10 = vunpack.i.h.bf16 %v3193_v14  ;;  %3377 = vrot.lane.b32.xlu0 %v3552_v13, %s3463_s16 }
  0x91   :  { %v368_v36 = vsel %vm358_vm2, %v3174_v26, %v3179_v27  ;;  %v3209_v51 = vunpack.i.l.bf16 %v3208_v5  ;;  %v3210_v59 = vunpack.i.h.bf16 %v3208_v5 }
  0x92   :  { %v364_v31 = vsel %vm358_vm2, %v3164_v9, %v3169_v25  ;;  %v365_v32 = vsel %vm358_vm2, %v3169_v25, %v3175_v23  ;;  %v366_v34 = vsel %vm358_vm2, %v3175_v23, %v3170_v24  ;;  %v367_v35 = vsel %vm358_vm2, %v3170_v24, %v3174_v26  ;;  %3387 = vrot.lane.b32.xlu2 %v3565_v18, %s3463_s16  ;;  %v3722_v25 = vld [vmem:[%s4086_s2 + $0x18] sm:$0xff] }
  0x93   :  { %499 = vmatpush.msra.mxu0 %v364_v31  ;;  %519 = vmatpush.msra.mxu1 %v365_v32  ;;  %v634_v54 = vsel %vm628_vm3, %v3194_v47, %v3195_v10 }
  0x94   :  { %3017 = vmatmul.msk.f32.vlgmr.msra.gmra.mxu2 %vm110_vm1, %v3605_v43 }
  0x95   :  { %3018 = vmatmul.msk.f32.vlgmr.msra.gmra.mxu3 %vm110_vm1, %v30_v29  ;;  %539 = vmatpush.msra.mxu2 %v366_v34 }
  0x96   :  { %3019 = vmatmul.msk.f32.vlgmr.msrb.gmra.mxu0 %vm110_vm1, %v30_v29  ;;  %3020 = vmatmul.msk.f32.vlgmr.msrb.gmra.mxu1 %vm110_vm1, %v30_v29  ;;  %v3188_v38 = vpop.permute.xlu1 %3187 }
  0x97   :  { %v3183_v39 = vpop.permute.xlu0 %3182  ;;  %559 = vmatpush.msra.mxu3 %v367_v35  ;;  %579 = vmatpush.msrb.mxu0 %v368_v36  ;;  %v3189_v40 = vunpack.i.l.bf16 %v3188_v38  ;;  %v3190_v43 = vunpack.i.h.bf16 %v3188_v38 }
  0x98   :  { %v3185_v41 = vunpack.i.h.bf16 %v3183_v39  ;;  %v3184_v42 = vunpack.i.l.bf16 %v3183_v39  ;;  %599 = vmatpush.msrb.mxu1 %v369_v37  ;;  %v3223_v0 = vpop.permute.xlu2 %3222 }
  0x99   :  { %v3224_v9 = vunpack.i.l.bf16 %v3223_v0  ;;  %v3225_v3 = vunpack.i.h.bf16 %v3223_v0 }
  0x9a   :  { %v629_v44 = vsel %vm628_vm3, %v3189_v40, %v3184_v42  ;;  %v630_v45 = vsel %vm628_vm3, %v3184_v42, %v3185_v41  ;;  %v631_v46 = vsel %vm628_vm3, %v3185_v41, %v3190_v43 }
  0x9c   :  { %3021 = vmatmul.msk.f32.vlgmr.msrb.gmra.mxu2 %vm110_vm1, %v30_v29 }
  0x9d   :  { %3022 = vmatmul.msk.f32.vlgmr.msrb.gmra.mxu3 %vm110_vm1, %v30_v29  ;;  %669 = vmatpush.msrb.mxu2 %v629_v44 }
  0x9e   :  { %3023 = vmatmul.msk.f32.vlgmr.msra.gmra.mxu0 %vm110_vm1, %v30_v29  ;;  %3024 = vmatmul.msk.f32.vlgmr.msra.gmra.mxu1 %vm110_vm1, %v30_v29  ;;  %v3203_v30 = vpop.permute.xlu1 %3202 }
  0x9f   :  { %v3198_v48 = vpop.permute.xlu0 %3197  ;;  %689 = vmatpush.msrb.mxu3 %v630_v45  ;;  %709 = vmatpush.msra.mxu0 %v631_v46  ;;  %v3204_v57 = vunpack.i.l.bf16 %v3203_v30  ;;  %v3205_v60 = vunpack.i.h.bf16 %v3203_v30 }
  0xa0   :  { %v3200_v49 = vunpack.i.h.bf16 %v3198_v48  ;;  %v3199_v50 = vunpack.i.l.bf16 %v3198_v48  ;;  %v3238_v19 = vpop.permute.xlu2 %3237 }
  0xa1   :  { %v637_v1 = vsel %vm628_vm3, %v3209_v51, %v3204_v57  ;;  %v638_v2 = vsel %vm628_vm3, %v3204_v57, %v3205_v60  ;;  %v639_v4 = vsel %vm628_vm3, %v3205_v60, %v3210_v59  ;;  %v3240_v23 = vunpack.i.h.bf16 %v3238_v19 }
  0xa2   :  { %v632_v52 = vsel %vm628_vm3, %v3190_v43, %v3199_v50  ;;  %v633_v53 = vsel %vm628_vm3, %v3199_v50, %v3194_v47  ;;  %v635_v55 = vsel %vm628_vm3, %v3195_v10, %v3200_v49  ;;  %v636_v56 = vsel %vm628_vm3, %v3200_v49, %v3209_v51 }
  0xa3   :  { %729 = vmatpush.msra.mxu1 %v632_v52  ;;  %v3239_v34 = vunpack.i.l.bf16 %v3238_v19 }
  0xa4   :  { %3025 = vmatmul.msk.f32.vlgmr.msra.gmra.mxu2 %vm110_vm1, %v30_v29 }
  0xa5   :  { %3026 = vmatmul.msk.f32.vlgmr.msra.gmra.mxu3 %vm110_vm1, %v30_v29  ;;  %749 = vmatpush.msra.mxu2 %v633_v53 }
  0xa6   :  { %3027 = vmatmul.msk.f32.vlgmr.msrb.gmra.mxu0 %vm110_vm1, %v30_v29  ;;  %3028 = vmatmul.msk.f32.vlgmr.msrb.gmra.mxu1 %vm110_vm1, %v30_v29  ;;  %v3218_v13 = vpop.permute.xlu1 %3217 }
  0xa7   :  { %769 = vmatpush.msra.mxu3 %v634_v54  ;;  %789 = vmatpush.msrb.mxu0 %v635_v55  ;;  %v3213_v58 = vpop.permute.xlu0 %3212  ;;  %v3220_v62 = vunpack.i.h.bf16 %v3218_v13  ;;  %v3219_v63 = vunpack.i.l.bf16 %v3218_v13  ;;  %v34_v54 = vld [vmem:[%s4086_s2 + $0x20] sm:$0xff] }
  0xa8   :  { %809 = vmatpush.msrb.mxu1 %v636_v56  ;;  %v3214_v6 = vunpack.i.l.bf16 %v3213_v58  ;;  %v3215_v8 = vunpack.i.h.bf16 %v3213_v58  ;;  %v3253_v31 = vpop.permute.xlu2 %3252 }
  0xa9   :  { %v910_v33 = vsel %vm909_vm4, %v3220_v62, %v3219_v63  ;;  %v3254_v14 = vunpack.i.l.bf16 %v3253_v31  ;;  %v3255_v45 = vunpack.i.h.bf16 %v3253_v31 }
  0xaa   :  { %v911_v15 = vsel %vm909_vm4, %v3219_v63, %v3214_v6  ;;  %v912_v16 = vsel %vm909_vm4, %v3214_v6, %v3215_v8  ;;  %v913_v17 = vsel %vm909_vm4, %v3215_v8, %v3224_v9 }
  0xac   :  { %3029 = vmatmul.msk.f32.vlgmr.msrb.gmra.mxu2 %vm110_vm1, %v32_v61 }
  0xad   :  { %3030 = vmatmul.msk.f32.vlgmr.msrb.gmra.mxu3 %vm110_vm1, %v32_v61  ;;  %829 = vmatpush.msrb.mxu2 %v637_v1 }
  0xae   :  { %3031 = vmatmul.msk.f32.vlgmr.msra.gmra.mxu0 %vm110_vm1, %v32_v61  ;;  %3032 = vmatmul.msk.f32.vlgmr.msra.gmra.mxu1 %vm110_vm1, %v32_v61  ;;  %v3233_v12 = vpop.permute.xlu1 %3232 }
  0xaf   :  { %849 = vmatpush.msrb.mxu3 %v638_v2  ;;  %869 = vmatpush.msra.mxu0 %v639_v4  ;;  %v3228_v7 = vpop.permute.xlu0 %3227  ;;  %v3234_v22 = vunpack.i.l.bf16 %v3233_v12  ;;  %v3235_v32 = vunpack.i.h.bf16 %v3233_v12 }
  0xb0   :  { %950 = vmatpush.msra.mxu1 %v910_v33  ;;  %v3230_v11 = vunpack.i.h.bf16 %v3228_v7  ;;  %v3229_v21 = vunpack.i.l.bf16 %v3228_v7  ;;  %v3268_v48 = vpop.permute.xlu2 %3267 }
  0xb1   :  { %v918_v18 = vsel %vm909_vm4, %v3234_v22, %v3240_v23  ;;  %v919_v37 = vsel %vm909_vm4, %v3240_v23, %v3235_v32  ;;  %v920_v38 = vsel %vm909_vm4, %v3235_v32, %v3239_v34  ;;  %v3270_v60 = vunpack.i.h.bf16 %v3268_v48 }
  0xb2   :  { %v914_v20 = vsel %vm909_vm4, %v3224_v9, %v3230_v11  ;;  %v915_v26 = vsel %vm909_vm4, %v3230_v11, %v3225_v3  ;;  %v916_v27 = vsel %vm909_vm4, %v3225_v3, %v3229_v21  ;;  %v917_v28 = vsel %vm909_vm4, %v3229_v21, %v3234_v22 }
  0xb4   :  { %3033 = vmatmul.msk.f32.vlgmr.msra.gmra.mxu2 %vm110_vm1, %v32_v61 }
  0xb5   :  { %3034 = vmatmul.msk.f32.vlgmr.msra.gmra.mxu3 %vm110_vm1, %v32_v61  ;;  %970 = vmatpush.msra.mxu2 %v911_v15 }
  0xb6   :  { %3035 = vmatmul.msk.f32.vlgmr.msrb.gmra.mxu0 %vm110_vm1, %v32_v61  ;;  %3036 = vmatmul.msk.f32.vlgmr.msrb.gmra.mxu1 %vm110_vm1, %v32_v61  ;;  %v3248_v29 = vpop.permute.xlu1 %3247 }
  0xb7   :  { %990 = vmatpush.msra.mxu3 %v912_v16  ;;  %1010 = vmatpush.msrb.mxu0 %v913_v17  ;;  %v3243_v24 = vpop.permute.xlu0 %3242  ;;  %v3249_v43 = vunpack.i.l.bf16 %v3248_v29  ;;  %v3250_v44 = vunpack.i.h.bf16 %v3248_v29 }
  0xb8   :  { %1030 = vmatpush.msrb.mxu1 %v914_v20  ;;  %v3245_v35 = vunpack.i.h.bf16 %v3243_v24  ;;  %v3244_v36 = vunpack.i.l.bf16 %v3243_v24  ;;  %v3283_v59 = vpop.permute.xlu2 %3282 }
  0xb9   :  { %v1193_v5 = vsel %vm1190_vm5, %v3254_v14, %v3249_v43  ;;  %v1194_v30 = vsel %vm1190_vm5, %v3249_v43, %v3250_v44  ;;  %v1195_v47 = vsel %vm1190_vm5, %v3250_v44, %v3255_v45  ;;  %v3285_v0 = vunpack.i.h.bf16 %v3283_v59 }
  0xba   :  { %v1191_v39 = vsel %vm1190_vm5, %v3244_v36, %v3245_v35  ;;  %v1192_v41 = vsel %vm1190_vm5, %v3245_v35, %v3254_v14  ;;  %v3284_v9 = vunpack.i.l.bf16 %v3283_v59 }
  0xbc   :  { %3037 = vmatmul.msk.f32.vlgmr.msrb.gmra.mxu2 %vm110_vm1, %v32_v61 }
  0xbd   :  { %3038 = vmatmul.msk.f32.vlgmr.msrb.gmra.mxu3 %vm110_vm1, %v32_v61  ;;  %1050 = vmatpush.msrb.mxu2 %v915_v26 }
  0xbe   :  { %3039 = vmatmul.msk.f32.vlgmr.msra.gmra.mxu0 %vm110_vm1, %v32_v61  ;;  %3040 = vmatmul.msk.f32.vlgmr.msra.gmra.mxu1 %vm110_vm1, %v3722_v25  ;;  %v3263_v42 = vpop.permute.xlu1 %3262  ;;  %v3269_v61 = vunpack.i.l.bf16 %v3268_v48 }
  0xbf   :  { %1070 = vmatpush.msrb.mxu3 %v916_v27  ;;  %1090 = vmatpush.msra.mxu0 %v917_v28  ;;  %v3258_v40 = vpop.permute.xlu0 %3257  ;;  %v3264_v46 = vunpack.i.l.bf16 %v3263_v42  ;;  %v3265_v51 = vunpack.i.h.bf16 %v3263_v42 }
  0xc0   :  { %1110 = vmatpush.msra.mxu1 %v918_v18  ;;  %v3259_v50 = vunpack.i.l.bf16 %v3258_v40  ;;  %v3260_v52 = vunpack.i.h.bf16 %v3258_v40  ;;  %v1472_v2 = vsel %vm1471_vm6, %v3269_v61, %v3270_v60  ;;  %v3298_v15 = vpop.permute.xlu2 %3297 }
  0xc1   :  { %v1196_v10 = vsel %vm1190_vm5, %v3255_v45, %v3264_v46  ;;  %v3299_v23 = vunpack.i.l.bf16 %v3298_v15  ;;  %v3300_v24 = vunpack.i.h.bf16 %v3298_v15 }
  0xc2   :  { %v1197_v55 = vsel %vm1190_vm5, %v3264_v46, %v3259_v50  ;;  %v1198_v56 = vsel %vm1190_vm5, %v3259_v50, %v3260_v52  ;;  %v1199_v13 = vsel %vm1190_vm5, %v3260_v52, %v3265_v51 }
  0xc3   :  { %v1482_v31 = vsel %vm1471_vm6, %v3299_v23, %v3300_v24 }
  0xc4   :  { %3041 = vmatmul.msk.f32.vlgmr.msra.gmra.mxu2 %vm110_vm1, %v3722_v25 }
  0xc5   :  { %3042 = vmatmul.msk.f32.vlgmr.msra.gmra.mxu3 %vm110_vm1, %v3722_v25  ;;  %1130 = vmatpush.msra.mxu2 %v919_v37 }
  0xc6   :  { %3043 = vmatmul.msk.f32.vlgmr.msrb.gmra.mxu0 %vm110_vm1, %v3722_v25  ;;  %3044 = vmatmul.msk.f32.vlgmr.msrb.gmra.mxu1 %vm110_vm1, %v3722_v25  ;;  %v3278_v57 = vpop.permute.xlu1 %3277 }
  0xc7   :  { %1150 = vmatpush.msra.mxu3 %v920_v38  ;;  %1231 = vmatpush.msrb.mxu0 %v1191_v39  ;;  %v3273_v49 = vpop.permute.xlu0 %3272  ;;  %v3279_v63 = vunpack.i.l.bf16 %v3278_v57  ;;  %v3280_v8 = vunpack.i.h.bf16 %v3278_v57 }
  0xc8   :  { %1251 = vmatpush.msrb.mxu1 %v1192_v41  ;;  %v3274_v53 = vunpack.i.l.bf16 %v3273_v49  ;;  %v3275_v62 = vunpack.i.h.bf16 %v3273_v49  ;;  %v3313_v18 = vpop.permute.xlu2 %3312 }
  0xc9   :  { %v1473_v4 = vsel %vm1471_vm6, %v3270_v60, %v3279_v63  ;;  %v1474_v6 = vsel %vm1471_vm6, %v3279_v63, %v3285_v0  ;;  %v1475_v16 = vsel %vm1471_vm6, %v3285_v0, %v3280_v8  ;;  %v1476_v17 = vsel %vm1471_vm6, %v3280_v8, %v3284_v9 }
  0xca   :  { %v1200_v58 = vsel %vm1190_vm5, %v3265_v51, %v3274_v53  ;;  %v1201_v33 = vsel %vm1190_vm5, %v3274_v53, %v3275_v62  ;;  %v3314_v44 = vunpack.i.l.bf16 %v3313_v18  ;;  %v3315_v45 = vunpack.i.h.bf16 %v3313_v18 }
  0xcc   :  { %3045 = vmatmul.msk.f32.vlgmr.msrb.gmra.mxu2 %vm110_vm1, %v3722_v25 }
  0xcd   :  { %3046 = vmatmul.msk.f32.vlgmr.msrb.gmra.mxu3 %vm110_vm1, %v3722_v25  ;;  %1271 = vmatpush.msrb.mxu2 %v1193_v5 }
  0xce   :  { %3047 = vmatmul.msk.f32.vlgmr.msra.gmra.mxu0 %vm110_vm1, %v3722_v25  ;;  %3048 = vmatmul.msk.f32.vlgmr.msra.gmra.mxu1 %vm110_vm1, %v3722_v25  ;;  %v3293_v7 = vpop.permute.xlu1 %3292 }
  0xcf   :  { %1291 = vmatpush.msrb.mxu3 %v1194_v30  ;;  %1311 = vmatpush.msra.mxu0 %v1195_v47  ;;  %v3288_v1 = vpop.permute.xlu0 %3287  ;;  %v3295_v12 = vunpack.i.h.bf16 %v3293_v7  ;;  %v3294_v22 = vunpack.i.l.bf16 %v3293_v7 }
  0xd0   :  { %1331 = vmatpush.msra.mxu1 %v1196_v10  ;;  %v3289_v11 = vunpack.i.l.bf16 %v3288_v1  ;;  %v3290_v21 = vunpack.i.h.bf16 %v3288_v1  ;;  %v3328_v43 = vpop.permute.xlu2 %3327  ;;  %v1758_v10 = vsel %vm1752_vm7, %v3314_v44, %v3315_v45 }
  0xd1   :  { %v1481_v29 = vsel %vm1471_vm6, %v3294_v22, %v3299_v23  ;;  %v3329_v47 = vunpack.i.l.bf16 %v3328_v43 }
  0xd2   :  { %v1477_v19 = vsel %vm1471_vm6, %v3284_v9, %v3289_v11  ;;  %v1478_v3 = vsel %vm1471_vm6, %v3289_v11, %v3295_v12  ;;  %v1479_v27 = vsel %vm1471_vm6, %v3295_v12, %v3290_v21  ;;  %v1480_v28 = vsel %vm1471_vm6, %v3290_v21, %v3294_v22 }
  0xd4   :  { %3049 = vmatmul.msk.f32.vlgmr.msra.gmra.mxu2 %vm110_vm1, %v3722_v25 }
  0xd5   :  { %3050 = vmatmul.msk.f32.vlgmr.msra.gmra.mxu3 %vm110_vm1, %v3722_v25  ;;  %1351 = vmatpush.msra.mxu2 %v1197_v55  ;;  %v35_v25 = vld [vmem:[%s4086_s2 + $0x28] sm:$0xff] }
  0xd6   :  { %3051 = vmatmul.msk.f32.vlgmr.msrb.gmra.mxu0 %vm110_vm1, %v34_v54  ;;  %3052 = vmatmul.msk.f32.vlgmr.msrb.gmra.mxu1 %vm110_vm1, %v34_v54  ;;  %v3308_v26 = vpop.permute.xlu1 %3307 }
  0xd7   :  { %1371 = vmatpush.msra.mxu3 %v1198_v56  ;;  %1391 = vmatpush.msrb.mxu0 %v1199_v13  ;;  %v3303_v20 = vpop.permute.xlu0 %3302  ;;  %v3309_v35 = vunpack.i.l.bf16 %v3308_v26  ;;  %v3310_v14 = vunpack.i.h.bf16 %v3308_v26  ;;  %v36_v56 = vld [vmem:[%s4086_s2 + $0x30] sm:$0xff] }
  0xd8   :  { %1411 = vmatpush.msrb.mxu1 %v1200_v58  ;;  %v3304_v34 = vunpack.i.l.bf16 %v3303_v20  ;;  %v3305_v36 = vunpack.i.h.bf16 %v3303_v20  ;;  %v3343_v59 = vpop.permute.xlu2 %3342 }
  0xd9   :  { %v3344_v7 = vunpack.i.l.bf16 %v3343_v59  ;;  %v3345_v21 = vunpack.i.h.bf16 %v3343_v59 }
  0xda   :  { %v1753_v38 = vsel %vm1752_vm7, %v3309_v35, %v3304_v34  ;;  %v1754_v39 = vsel %vm1752_vm7, %v3304_v34, %v3305_v36  ;;  %v1755_v40 = vsel %vm1752_vm7, %v3305_v36, %v3310_v14 }
  0xdc   :  { %3053 = vmatmul.msk.f32.vlgmr.msrb.gmra.mxu2 %vm110_vm1, %v34_v54 }
  0xdd   :  { %3054 = vmatmul.msk.f32.vlgmr.msrb.gmra.mxu3 %vm110_vm1, %v34_v54  ;;  %1431 = vmatpush.msrb.mxu2 %v1201_v33 }
  0xde   :  { %3055 = vmatmul.msk.f32.vlgmr.msra.gmra.mxu0 %vm110_vm1, %v34_v54  ;;  %3056 = vmatmul.msk.f32.vlgmr.msra.gmra.mxu1 %vm110_vm1, %v34_v54  ;;  %v3323_v41 = vpop.permute.xlu1 %3322 }
  0xdf   :  { %1512 = vmatpush.msrb.mxu3 %v1472_v2  ;;  %1532 = vmatpush.msra.mxu0 %v1473_v4  ;;  %v3318_v32 = vpop.permute.xlu0 %3317  ;;  %v3324_v53 = vunpack.i.l.bf16 %v3323_v41  ;;  %v3325_v55 = vunpack.i.h.bf16 %v3323_v41 }
  0xe0   :  { %1552 = vmatpush.msra.mxu1 %v1474_v6  ;;  %v3319_v37 = vunpack.i.l.bf16 %v3318_v32  ;;  %v3320_v46 = vunpack.i.h.bf16 %v3318_v32 }
  0xe1   :  { %v1761_v61 = vsel %vm1752_vm7, %v3329_v47, %v3324_v53  ;;  %v1762_v62 = vsel %vm1752_vm7, %v3324_v53, %v3325_v55 }
  0xe2   :  { %v1756_v42 = vsel %vm1752_vm7, %v3310_v14, %v3319_v37  ;;  %v1757_v48 = vsel %vm1752_vm7, %v3319_v37, %v3314_v44  ;;  %v1759_v49 = vsel %vm1752_vm7, %v3315_v45, %v3320_v46  ;;  %v1760_v51 = vsel %vm1752_vm7, %v3320_v46, %v3329_v47 }
  0xe3   :  { %v3464_v45 = vmov 0  }
  0xe4   :  { %3057 = vmatmul.msk.f32.vlgmr.msra.gmra.mxu2 %vm110_vm1, %v34_v54  ;;  %3391 = vset.pattern.permute.xlu0 %v3464_v45 }
  0xe5   :  { %3058 = vmatmul.msk.f32.vlgmr.msra.gmra.mxu3 %vm110_vm1, %v34_v54  ;;  %1572 = vmatpush.msra.mxu2 %v1475_v16 }
  0xe6   :  { %3059 = vmatmul.msk.f32.vlgmr.msrb.gmra.mxu0 %vm110_vm1, %v34_v54  ;;  %3060 = vmatmul.msk.f32.vlgmr.msrb.gmra.mxu1 %vm110_vm1, %v34_v54  ;;  %v3338_v52 = vpop.permute.xlu1 %3337 }
  0xe7   :  { %1592 = vmatpush.msra.mxu3 %v1476_v17  ;;  %1612 = vmatpush.msrb.mxu0 %v1477_v19  ;;  %v3333_v50 = vpop.permute.xlu0 %3332  ;;  %v3340_v13 = vunpack.i.h.bf16 %v3338_v52  ;;  %v3339_v57 = vunpack.i.l.bf16 %v3338_v52  ;;  %v3358_v19 = vpop.permute.xlu2 %3357 }
  0xe8   :  { %1632 = vmatpush.msrb.mxu1 %v1478_v3  ;;  %v3334_v4 = vunpack.i.l.bf16 %v3333_v50  ;;  %v3335_v6 = vunpack.i.h.bf16 %v3333_v50 }
  0xe9   :  { %v2034_v0 = vsel %vm2033_vm8, %v3340_v13, %v3339_v57 }
  0xea   :  { %v2035_v15 = vsel %vm2033_vm8, %v3339_v57, %v3334_v4  ;;  %v2036_v16 = vsel %vm2033_vm8, %v3334_v4, %v3335_v6  ;;  %v2037_v17 = vsel %vm2033_vm8, %v3335_v6, %v3344_v7 }
  0xec   :  { %3061 = vmatmul.msk.f32.vlgmr.msrb.gmra.mxu2 %vm110_vm1, %v34_v54  ;;  %v3330_v54 = vunpack.i.h.bf16 %v3328_v43  ;;  %v2571_v43 = vld [vmem:[%s4087_s3] sm:$0xff]  ;;  %s2993_s3 = sshll.u32 %s4092_s8, 4  ;;  %s2994_s3 = int_to_ptr.hbm [resolvable:$true] %s2993_s3 }
  0xed   :  { %3062 = vmatmul.msk.f32.vlgmr.msrb.gmra.mxu3 %vm110_vm1, %v35_v25  ;;  %1652 = vmatpush.msrb.mxu2 %v1479_v27 }
  0xee   :  { %3063 = vmatmul.msk.f32.vlgmr.msra.gmra.mxu0 %vm110_vm1, %v35_v25  ;;  %3064 = vmatmul.msk.f32.vlgmr.msra.gmra.mxu1 %vm110_vm1, %v35_v25  ;;  %v1763_v63 = vsel %vm1752_vm7, %v3325_v55, %v3330_v54 }
  0xef   :  { %1672 = vmatpush.msrb.mxu3 %v1480_v28  ;;  %1692 = vmatpush.msra.mxu0 %v1481_v29  ;;  %v3348_v1 = vpop.permute.xlu0 %3347  ;;  %v3859_v28 = vld [vmem:[%s4086_s2 + $0x38] sm:$0xff]  ;;  %v3373_v36 = vpop.permute.xlu2 %3372 }
  0xf0   :  { %1712 = vmatpush.msra.mxu1 %v1482_v31  ;;  %v3350_v8 = vunpack.i.h.bf16 %v3348_v1  ;;  %v3353_v11 = vpop.permute.xlu1 %3352  ;;  %v3349_v23 = vunpack.i.l.bf16 %v3348_v1  ;;  %2574 = vperm.xlu0 %3391, %v2571_v43   ;;  %v3375_v55 = vunpack.i.h.bf16 %v3373_v36 }
  0xf1   :  { %v3354_v24 = vunpack.i.l.bf16 %v3353_v11  ;;  %v3355_v37 = vunpack.i.h.bf16 %v3353_v11 }
  0xf2   :  { %v2038_v20 = vsel %vm2033_vm8, %v3344_v7, %v3350_v8  ;;  %v2039_v29 = vsel %vm2033_vm8, %v3350_v8, %v3345_v21  ;;  %v2040_v18 = vsel %vm2033_vm8, %v3345_v21, %v3349_v23 }
  0xf3   :  { %v2041_v31 = vsel %vm2033_vm8, %v3349_v23, %v3354_v24 }
  0xf4   :  { %3065 = vmatmul.msk.f32.vlgmr.msra.gmra.mxu2 %vm110_vm1, %v35_v25 }
  0xf5   :  { %3066 = vmatmul.msk.f32.vlgmr.msra.gmra.mxu3 %vm110_vm1, %v35_v25  ;;  %1793 = vmatpush.msra.mxu2 %v1753_v38 }
  0xf6   :  { %3067 = vmatmul.msk.f32.vlgmr.msrb.gmra.mxu0 %vm110_vm1, %v35_v25  ;;  %3068 = vmatmul.msk.f32.vlgmr.msrb.gmra.mxu1 %vm110_vm1, %v35_v25 }
  0xf7   :  { %1813 = vmatpush.msra.mxu3 %v1754_v39  ;;  %1833 = vmatpush.msrb.mxu0 %v1755_v40  ;;  %v3359_v39 = vunpack.i.l.bf16 %v3358_v19  ;;  %v3388_v1 = vpop.permute.xlu2 %3387 }
  0xf8   :  { %1853 = vmatpush.msrb.mxu1 %v1756_v42  ;;  %v3374_v42 = vunpack.i.l.bf16 %v3373_v36 }
  0xf9   :  { %v3805_v5 = vpop.f32.mrf.mxu0  ;;  %v3807_v30 = vpop.f32.mrf.mxu1 }
  0xfa   :  { %v3368_v32 = vpop.permute.xlu1 %3367  ;;  %v3363_v35 = vpop.permute.xlu0 %3362 }
  0xfb   :  { %v3365_v40 = vunpack.i.h.bf16 %v3363_v35  ;;  %v3364_v41 = vunpack.i.l.bf16 %v3363_v35  ;;  %v3369_v52 = vunpack.i.l.bf16 %v3368_v32  ;;  %v3370_v54 = vunpack.i.h.bf16 %v3368_v32 }
  0xfc   :  { %3069 = vmatmul.msk.f32.vlgmr.msrb.gmra.mxu2 %vm110_vm1, %v35_v25 }
  0xfd   :  { %3070 = vmatmul.msk.f32.vlgmr.msrb.gmra.mxu3 %vm110_vm1, %v35_v25  ;;  %1873 = vmatpush.msrb.mxu2 %v1757_v48  ;;  %v2044_v48 = vsel %vm2033_vm8, %v3355_v37, %v3359_v39  ;;  %v2317_v59 = vsel %vm2314_vm9, %v3374_v42, %v3369_v52 }
  0xfe   :  { %3071 = vmatmul.msk.f32.vlgmr.msra.gmra.mxu0 %vm110_vm1, %v35_v25  ;;  %3072 = vmatmul.msk.f32.vlgmr.msra.gmra.mxu1 %vm110_vm1, %v35_v25  ;;  %v3360_v25 = vunpack.i.h.bf16 %v3358_v19  ;;  %v38_v19 = vld [vmem:[%s4086_s2 + $0x40] sm:$0xff] }
  0xff   :  { %1893 = vmatpush.msrb.mxu3 %v1758_v10  ;;  %1913 = vmatpush.msra.mxu0 %v1759_v49  ;;  %v2315_v10 = vsel %vm2314_vm9, %v3364_v41, %v3365_v40  ;;  %v2316_v49 = vsel %vm2314_vm9, %v3365_v40, %v3374_v42 }
 0x100   :  { %1933 = vmatpush.msra.mxu1 %v1760_v51  ;;  %v2042_v34 = vsel %vm2033_vm8, %v3354_v24, %v3360_v25  ;;  %v2043_v47 = vsel %vm2033_vm8, %v3360_v25, %v3355_v37 }
 0x102   :  { %v3820_v58 = vpop.f32.mrf.mxu0  ;;  %v3383_v50 = vpop.permute.xlu1 %3382 }
 0x103   :  { %v3822_v60 = vpop.f32.mrf.mxu1  ;;  %v3385_v8 = vunpack.i.h.bf16 %v3383_v50 }
 0x104   :  { %3073 = vmatmul.msk.f32.vlgmr.msra.gmra.mxu2 %vm110_vm1, %v36_v56 }
 0x105   :  { %3074 = vmatmul.msk.f32.vlgmr.msra.gmra.mxu3 %vm110_vm1, %v36_v56  ;;  %1953 = vmatpush.msra.mxu2 %v1761_v61  ;;  %v2318_v61 = vsel %vm2314_vm9, %v3369_v52, %v3370_v54 }
 0x106   :  { %3075 = vmatmul.msk.f32.vlgmr.msrb.gmra.mxu0 %vm110_vm1, %v36_v56  ;;  %3076 = vmatmul.msk.f32.vlgmr.msrb.gmra.mxu1 %vm110_vm1, %v36_v56 }
 0x107   :  { %v3832_v2 = vpop.f32.mrf.mxu2  ;;  %1973 = vmatpush.msra.mxu3 %v1762_v62  ;;  %1993 = vmatpush.msrb.mxu0 %v1763_v63  ;;  %v2319_v62 = vsel %vm2314_vm9, %v3370_v54, %v3375_v55  ;;  %v3378_v63 = vpop.permute.xlu0 %3377 }
 0x108   :  { %v3834_v33 = vpop.f32.mrf.mxu3  ;;  %2074 = vmatpush.msrb.mxu1 %v2034_v0  ;;  %v3379_v6 = vunpack.i.l.bf16 %v3378_v63  ;;  %v3380_v11 = vunpack.i.h.bf16 %v3378_v63 }
 0x10a   :  { %v2322_v24 = vsel %vm2314_vm9, %v3379_v6, %v3380_v11  ;;  %v2323_v25 = vsel %vm2314_vm9, %v3380_v11, %v3385_v8 }
 0x10b   :  { %v3836_v9 = vpop.f32.mrf.mxu0  ;;  %v3838_v12 = vpop.f32.mrf.mxu1 }
 0x10c   :  { %3077 = vmatmul.msk.f32.vlgmr.msrb.gmra.mxu2 %vm110_vm1, %v36_v56 }
 0x10d   :  { %3078 = vmatmul.msk.f32.vlgmr.msrb.gmra.mxu3 %vm110_vm1, %v36_v56  ;;  %2094 = vmatpush.msrb.mxu2 %v2035_v15 }
 0x10e   :  { %3079 = vmatmul.msk.f32.vlgmr.msra.gmra.mxu0 %vm110_vm1, %v36_v56  ;;  %3080 = vmatmul.msk.f32.vlgmr.msra.gmra.mxu1 %vm110_vm1, %v36_v56 }
 0x10f   :  { %v3848_v3 = vpop.f32.mrf.mxu2  ;;  %2114 = vmatpush.msrb.mxu3 %v2036_v16  ;;  %2134 = vmatpush.msra.mxu0 %v2037_v17  ;;  %v3389_v16 = vunpack.i.l.bf16 %v3388_v1 }
 0x110   :  { %v3850_v22 = vpop.f32.mrf.mxu3  ;;  %2154 = vmatpush.msra.mxu1 %v2038_v20 }
 0x113   :  { %v3852_v26 = vpop.f32.mrf.mxu0  ;;  %v3854_v27 = vpop.f32.mrf.mxu1 }
 0x114   :  { %3081 = vmatmul.msk.f32.vlgmr.msra.gmra.mxu2 %vm110_vm1, %v36_v56  ;;  %v442_v15 = vadd.f32 %v3854_v27, %v3832_v2  ;;  %v2324_v2 = vsel %vm2314_vm9, %v3385_v8, %v3389_v16 }
 0x115   :  { %3082 = vmatmul.msk.f32.vlgmr.msra.gmra.mxu3 %vm110_vm1, %v36_v56  ;;  %2174 = vmatpush.msra.mxu2 %v2039_v29  ;;  %v422_v29 = vadd.f32 %v3852_v26, %v3807_v30 }
 0x116   :  { %3083 = vmatmul.msk.f32.vlgmr.msrb.gmra.mxu0 %vm110_vm1, %v36_v56  ;;  %3084 = vmatmul.msk.f32.vlgmr.msrb.gmra.mxu1 %vm110_vm1, %v3859_v28  ;;  %v3384_v56 = vunpack.i.l.bf16 %v3383_v50 }
 0x117   :  { %v3870_v14 = vpop.f32.mrf.mxu2  ;;  %2194 = vmatpush.msra.mxu3 %v2040_v18  ;;  %2214 = vmatpush.msrb.mxu0 %v2041_v31  ;;  %v3390_v31 = vunpack.i.h.bf16 %v3388_v1 }
 0x118   :  { %v3872_v38 = vpop.f32.mrf.mxu3  ;;  %2234 = vmatpush.msrb.mxu1 %v2042_v34  ;;  %v2320_v0 = vsel %vm2314_vm9, %v3375_v55, %v3384_v56  ;;  %v2321_v23 = vsel %vm2314_vm9, %v3384_v56, %v3379_v6 }
 0x119   :  { %v402_v27 = vadd.f32 %v3872_v38, %v3805_v5  ;;  %v2325_v39 = vsel %vm2314_vm9, %v3389_v16, %v3390_v31 }
 0x11b   :  { %v3877_v44 = vpop.f32.mrf.mxu0  ;;  %v3879_v46 = vpop.f32.mrf.mxu1 }
 0x11c   :  { %3085 = vmatmul.msk.f32.vlgmr.msrb.gmra.mxu2 %vm110_vm1, %v3859_v28 }
 0x11d   :  { %3086 = vmatmul.msk.f32.vlgmr.msrb.gmra.mxu3 %vm110_vm1, %v3859_v28  ;;  %2254 = vmatpush.msrb.mxu2 %v2043_v47 }
 0x11e   :  { %3087 = vmatmul.msk.f32.vlgmr.msra.gmra.mxu0 %vm110_vm1, %v3859_v28  ;;  %3088 = vmatmul.msk.f32.vlgmr.msra.gmra.mxu1 %vm110_vm1, %v3859_v28 }
 0x11f   :  { %v3893_v51 = vpop.f32.mrf.mxu2  ;;  %2274 = vmatpush.msrb.mxu3 %v2044_v48  ;;  %2355 = vmatpush.msra.mxu0 %v2315_v10 }
 0x120   :  { %v481_v53 = vpop.f32.mrf.mxu3  ;;  %2375 = vmatpush.msra.mxu1 %v2316_v49 }
 0x121   :  { %v482_v30 = vadd.f32 %v481_v53, %v3820_v58 }
 0x123   :  { %v3895_v13 = vpop.f32.mrf.mxu0  ;;  %v601_v57 = vpop.f32.mrf.mxu1 }
 0x124   :  { %3089 = vmatmul.msk.f32.vlgmr.msra.gmra.mxu2 %vm110_vm1, %v3859_v28  ;;  %v602_v42 = vadd.f32 %v601_v57, %v3870_v14  ;;  %v582_v14 = vadd.f32 %v3895_v13, %v3838_v12 }
 0x125   :  { %3090 = vmatmul.msk.f32.vlgmr.msra.gmra.mxu3 %vm110_vm1, %v3859_v28  ;;  %2395 = vmatpush.msra.mxu2 %v2317_v59 }
 0x126   :  { %3091 = vmatmul.msk.f32.vlgmr.msrb.gmra.mxu0 %vm110_vm1, %v3859_v28  ;;  %3092 = vmatmul.msk.f32.vlgmr.msrb.gmra.mxu1 %vm110_vm1, %v3859_v28 }
 0x127   :  { %v541_v4 = vpop.f32.mrf.mxu2  ;;  %2415 = vmatpush.msra.mxu3 %v2318_v61  ;;  %2435 = vmatpush.msrb.mxu0 %v2319_v62 }
 0x128   :  { %v561_v7 = vpop.f32.mrf.mxu3  ;;  %2455 = vmatpush.msrb.mxu1 %v2320_v0  ;;  %v542_v36 = vadd.f32 %v541_v4, %v3850_v22 }
 0x129   :  { %v562_v58 = vadd.f32 %v561_v7, %v3836_v9 }
 0x12b   :  { %v711_v17 = vpop.f32.mrf.mxu0  ;;  %v731_v21 = vpop.f32.mrf.mxu1 }
 0x12c   :  { %v3914_v20 = vadd.f32 %v711_v17, %v442_v15  ;;  %3093 = vmatmul.msk.f32.vlgmr.msrb.gmra.mxu2 %vm110_vm1, %v3859_v28 }
 0x12d   :  { %3094 = vmatmul.msk.f32.vlgmr.msrb.gmra.mxu3 %vm110_vm1, %v3859_v28  ;;  %2475 = vmatpush.msrb.mxu2 %v2321_v23  ;;  %v522_v28 = vadd.f32 %v3879_v46, %v3848_v3  ;;  %v502_v3 = vadd.f32 %v3877_v44, %v3822_v60  ;;  %v462_v60 = vadd.f32 %v3893_v51, %v3834_v33 }
 0x12e   :  { %3095 = vmatmul.msk.f32.vlgmr.msra.gmra.mxu0 %vm110_vm1, %v38_v19  ;;  %3096 = vmatmul.msk.f32.vlgmr.msra.gmra.mxu1 %vm110_vm1, %v38_v19 }
 0x12f   :  { %v671_v18 = vpop.f32.mrf.mxu2  ;;  %2495 = vmatpush.msrb.mxu3 %v2322_v24  ;;  %2515 = vmatpush.msra.mxu0 %v2323_v25  ;;  %v877_v50 = vadd.f32 %v731_v21, %v462_v60 }
 0x130   :  { %v874_v32 = vadd.f32 %v671_v18, %v402_v27  ;;  %v691_v34 = vpop.f32.mrf.mxu3  ;;  %2535 = vmatpush.msra.mxu1 %v2324_v2 }
 0x131   :  { %v875_v35 = vadd.f32 %v691_v34, %v422_v29 }
 0x133   :  { %v791_v5 = vpop.f32.mrf.mxu0  ;;  %v811_v38 = vpop.f32.mrf.mxu1 }
 0x134   :  { %v880_v37 = vadd.f32 %v791_v5, %v522_v28  ;;  %v881_v40 = vadd.f32 %v811_v38, %v542_v36  ;;  %3097 = vmatmul.msk.f32.vlgmr.msra.gmra.mxu2 %vm110_vm1, %v38_v19 }
 0x135   :  { %3098 = vmatmul.msk.f32.vlgmr.msra.gmra.mxu3 %vm110_vm1, %v38_v19  ;;  %2555 = vmatpush.msra.mxu2 %v2325_v39 }
 0x136   :  { %3099 = vmatmul.msk.f32.vlgmr.msrb.gmra.mxu0 %vm110_vm1, %v38_v19  ;;  %3100 = vmatmul.msk.f32.vlgmr.msrb.gmra.mxu1 %vm110_vm1, %v38_v19 }
 0x137   :  { %v751_v22 = vpop.f32.mrf.mxu2 }
 0x138   :  { %v878_v26 = vadd.f32 %v751_v22, %v482_v30  ;;  %v771_v41 = vpop.f32.mrf.mxu3 }
 0x139   :  { %v879_v43 = vadd.f32 %v771_v41, %v502_v3 }
 0x13b   :  { %v871_v45 = vpop.f32.mrf.mxu0  ;;  %v952_v47 = vpop.f32.mrf.mxu1 }
 0x13c   :  { %v884_v46 = vadd.f32 %v871_v45, %v602_v42  ;;  %v1155_v48 = vadd.f32 %v952_v47, %v874_v32  ;;  %3101 = vmatmul.msk.f32.vlgmr.msrb.gmra.mxu2 %vm110_vm1, %v38_v19 }
 0x13d   :  { %3102 = vmatmul.msk.f32.vlgmr.msrb.gmra.mxu3 %vm110_vm1, %v38_v19 }
 0x13e   :  { %3103 = vmatmul.msk.f32.vlgmr.msra.gmra.mxu0 %vm110_vm1, %v38_v19  ;;  %3104 = vmatmul.msk.f32.vlgmr.msra.gmra.mxu1 %vm110_vm1, %v38_v19 }
 0x13f   :  { %v831_v44 = vpop.f32.mrf.mxu2 }
 0x140   :  { %v882_v10 = vadd.f32 %v831_v44, %v562_v58  ;;  %v851_v49 = vpop.f32.mrf.mxu3 }
 0x141   :  { %v883_v52 = vadd.f32 %v851_v49, %v582_v14  ;;  %v2599_v14 = vld [vmem:[%s4090_s6] sm:$0xff] }
 0x142   :  { %2611 = vst [vmem:[#allocation1] ss:$2 sm:$0xff] %v2599_v14 }
 0x143   :  { %v1012_v53 = vpop.f32.mrf.mxu0  ;;  %v1032_v55 = vpop.f32.mrf.mxu1 }
 0x144   :  { %v1158_v54 = vadd.f32 %v1012_v53, %v877_v50  ;;  %v1159_v56 = vadd.f32 %v1032_v55, %v878_v26  ;;  %3105 = vmatmul.msk.f32.vlgmr.msra.gmra.mxu2 %vm110_vm1, %v38_v19 }
 0x147   :  { %v972_v9 = vpop.f32.mrf.mxu2 }
 0x148   :  { %v1156_v57 = vadd.f32 %v972_v9, %v875_v35  ;;  %v992_v59 = vpop.f32.mrf.mxu3 }
 0x149   :  { %v1157_v61 = vadd.f32 %v992_v59, %v3914_v20  ;;  %v2618_v53 = vld.sshfl [vmem:[#allocation1] sm:$0xff pattern:$0x75316420] }
 0x14a   :  { %2657 = vmatpush.xpose.msra.mxu3 %v2618_v53 }
 0x14b   :  { %v1092_v33 = vpop.f32.mrf.mxu0  ;;  %v1112_v62 = vpop.f32.mrf.mxu1 }
 0x14c   :  { %v1162_v51 = vadd.f32 %v1092_v33, %v881_v40  ;;  %v1163_v12 = vadd.f32 %v1112_v62, %v882_v10 }
 0x14f   :  { %v1052_v13 = vpop.f32.mrf.mxu2 }
 0x150   :  { %v1160_v63 = vadd.f32 %v1052_v13, %v879_v43  ;;  %v1072_v0 = vpop.f32.mrf.mxu3 }
 0x151   :  { %v1161_v1 = vadd.f32 %v1072_v0, %v880_v37 }
 0x153   :  { %v1233_v4 = vpop.f32.mrf.mxu0  ;;  %v1253_v7 = vpop.f32.mrf.mxu1 }
 0x154   :  { %v3953_v6 = vadd.f32 %v1233_v4, %v1155_v48  ;;  %v3955_v8 = vadd.f32 %v1253_v7, %v1156_v57  ;;  %v2602_v4 = vld [vmem:[%s4090_s6 + $0x18] sm:$0xff] }
 0x155   :  { %2617 = vst [vmem:[#allocation1 + $0x30] ss:$2 sm:$0xff] %v2602_v4 }
 0x157   :  { %v1132_v11 = vpop.f32.mrf.mxu2 }
 0x158   :  { %v1164_v15 = vadd.f32 %v1132_v11, %v883_v52  ;;  %v1152_v16 = vpop.f32.mrf.mxu3  ;;  %v2603_v52 = vld [vmem:[%s4090_s6 + $0x20] sm:$0xff] }
 0x159   :  { %v1165_v17 = vadd.f32 %v1152_v16, %v884_v46 }
 0x15b   :  { %v1313_v19 = vpop.f32.mrf.mxu0  ;;  %v1333_v21 = vpop.f32.mrf.mxu1 }
 0x15c   :  { %v3957_v20 = vadd.f32 %v1313_v19, %v1159_v56  ;;  %v3959_v23 = vadd.f32 %v1333_v21, %v1160_v63  ;;  %v2601_v56 = vld [vmem:[%s4090_s6 + $0x10] sm:$0xff] }
 0x15d   :  { %2615 = vst [vmem:[#allocation1 + $0x20] ss:$2 sm:$0xff] %v2601_v56 }
 0x15f   :  { %v1273_v24 = vpop.f32.mrf.mxu2 }
 0x160   :  { %v1438_v25 = vadd.f32 %v1273_v24, %v1157_v61  ;;  %v1293_v2 = vpop.f32.mrf.mxu3  ;;  %v2600_v61 = vld [vmem:[%s4090_s6 + $0x8] sm:$0xff]  ;;  %v2625_v24 = vld.sshfl [vmem:[#allocation1 + $0x38] sm:$0xff pattern:$0x75316420] }
 0x161   :  { %v3961_v27 = vadd.f32 %v1293_v2, %v1158_v54  ;;  %v2619_v54 = vld.sshfl [vmem:[#allocation1 + $0x8] sm:$0xff pattern:$0x75316420]  ;;  %2613 = vst [vmem:[#allocation1 + $0x10] ss:$2 sm:$0xff] %v2600_v61 }
 0x162   :  { %2626 = vst [vmem:[#allocation1] ss:$2 sm:$0xff] %v2603_v52  ;;  %2677 = vmatpush.xpose.msrb.mxu0 %v2619_v54 }
 0x163   :  { %v1393_v29 = vpop.f32.mrf.mxu0  ;;  %v1413_v31 = vpop.f32.mrf.mxu1 }
 0x164   :  { %v3963_v18 = vadd.f32 %v1393_v29, %v1163_v12  ;;  %v3965_v32 = vadd.f32 %v1413_v31, %v1164_v15  ;;  %v2623_v62 = vld.sshfl [vmem:[#allocation1 + $0x28] sm:$0xff pattern:$0x75316420] }
 0x165   :  { %v2604_v15 = vld [vmem:[%s4090_s6 + $0x28] sm:$0xf] }
 0x166   :  { %2757 = vmatpush.xpose.msra.mxu0 %v2623_v62 }
 0x167   :  { %v1353_v34 = vpop.f32.mrf.mxu2 }
 0x168   :  { %v1442_v28 = vadd.f32 %v1353_v34, %v1161_v1  ;;  %v1373_v35 = vpop.f32.mrf.mxu3  ;;  %v2621_v0 = vld.sshfl [vmem:[#allocation1 + $0x18] sm:$0xff pattern:$0x75316420]  ;;  %v2620_v1 = vld.sshfl [vmem:[#allocation1 + $0x10] sm:$0xff pattern:$0x75316420] }
 0x169   :  { %v3967_v36 = vadd.f32 %v1373_v35, %v1162_v51  ;;  %v2622_v51 = vld.sshfl [vmem:[#allocation1 + $0x20] sm:$0xff pattern:$0x75316420]  ;;  %2717 = vmatpush.xpose.msrb.mxu2 %v2621_v0  ;;  %2697 = vmatpush.xpose.msrb.mxu1 %v2620_v1  ;;  %2627 = vst [vmem:[#allocation1 + $0x10] ss:$2 sm:$0xff] %v2604_v15 }
 0x16a   :  { %2737 = vmatpush.xpose.msrb.mxu3 %v2622_v51  ;;  %v2628_v52 = vld.sshfl [vmem:[#allocation1] sm:$0xff pattern:$0x75316420] }
 0x16b   :  { %v1534_v5 = vpop.f32.mrf.mxu0  ;;  %v1554_v37 = vpop.f32.mrf.mxu1 }
 0x16c   :  { %v3969_v38 = vadd.f32 %v1554_v37, %v1438_v25  ;;  %v1718_v21 = vadd.f32 %v1534_v5, %v3955_v8  ;;  %v2624_v25 = vld.sshfl [vmem:[#allocation1 + $0x30] sm:$0xff pattern:$0x75316420] }
 0x16d   :  { %2797 = vmatpush.xpose.msra.mxu2 %v2625_v24  ;;  %2777 = vmatpush.xpose.msra.mxu1 %v2624_v25 }
 0x16f   :  { %v1433_v39 = vpop.f32.mrf.mxu2 }
 0x170   :  { %v1446_v40 = vadd.f32 %v1433_v39, %v1165_v17  ;;  %v1514_v30 = vpop.f32.mrf.mxu3  ;;  %v4025_v39 = vpop.permute.xlu0 %2574 }
 0x171   :  { %v1717_v19 = vadd.f32 %v1514_v30, %v3953_v6 }
 0x173   :  { %v3971_v3 = vpop.f32.mrf.mxu0  ;;  %v1634_v22 = vpop.f32.mrf.mxu1 }
 0x174   :  { %v3973_v26 = vadd.f32 %v1634_v22, %v1442_v28  ;;  %v1722_v5 = vadd.f32 %v3971_v3, %v3959_v23 }
 0x177   :  { %v3975_v41 = vpop.f32.mrf.mxu2 }
 0x178   :  { %v3977_v42 = vpop.f32.mrf.mxu3  ;;  %v1720_v23 = vadd.f32 %v3975_v41, %v3961_v27 }
 0x179   :  { %v1721_v6 = vadd.f32 %v3977_v42, %v3957_v20 }
 0x17b   :  { %v3979_v43 = vpop.f32.mrf.mxu0  ;;  %v1714_v45 = vpop.f32.mrf.mxu1 }
 0x17c   :  { %v3981_v46 = vadd.f32 %v1714_v45, %v1446_v40  ;;  %v1726_v1 = vadd.f32 %v3979_v43, %v3965_v32 }
 0x17f   :  { %v3983_v47 = vpop.f32.mrf.mxu2 }
 0x180   :  { %v3985_v48 = vpop.f32.mrf.mxu3  ;;  %v1724_v43 = vadd.f32 %v3983_v47, %v3967_v36 }
 0x181   :  { %v1725_v62 = vadd.f32 %v3985_v48, %v3963_v18 }
 0x183   :  { %v3987_v58 = vpop.f32.mrf.mxu0  ;;  %v3989_v60 = vpop.f32.mrf.mxu1 }
 0x187   :  { %v1795_v44 = vpop.f32.mrf.mxu2 }
 0x188   :  { %v1815_v10 = vpop.f32.mrf.mxu3  ;;  %v1998_v2 = vadd.f32 %v1795_v44, %v1717_v19 }
 0x189   :  { %v1999_v31 = vadd.f32 %v1815_v10, %v1718_v21 }
 0x18b   :  { %v3994_v49 = vpop.f32.mrf.mxu0  ;;  %v3996_v50 = vpop.f32.mrf.mxu1 }
 0x18f   :  { %v1875_v55 = vpop.f32.mrf.mxu2 }
 0x190   :  { %v1895_v9 = vpop.f32.mrf.mxu3  ;;  %v2002_v14 = vadd.f32 %v1875_v55, %v1721_v6  ;;  %v2000_v55 = vadd.f32 %v3987_v58, %v3969_v38 }
 0x191   :  { %v2003_v53 = vadd.f32 %v1895_v9, %v1722_v5 }
 0x193   :  { %v4004_v57 = vpop.f32.mrf.mxu0  ;;  %v2076_v59 = vpop.f32.mrf.mxu1 }
 0x194   :  { %v2279_v28 = vadd.f32 %v2076_v59, %v1998_v2  ;;  %v2629_v59 = vld.sshfl [vmem:[#allocation1 + $0x8] sm:$0xff pattern:$0x75316420] }
 0x197   :  { %v4009_v33 = vpop.f32.mrf.mxu2 }
 0x198   :  { %v4011_v12 = vpop.f32.mrf.mxu3  ;;  %v2006_v41 = vadd.f32 %v4009_v33, %v1725_v62 }
 0x199   :  { %v2007_v38 = vadd.f32 %v4011_v12, %v1726_v1  ;;  %v2004_v12 = vadd.f32 %v3994_v49, %v3973_v26 }
 0x19b   :  { %v2136_v13 = vpop.f32.mrf.mxu0  ;;  %v2156_v63 = vpop.f32.mrf.mxu1 }
 0x19c   :  { %v2283_v61 = vadd.f32 %v2156_v63, %v2002_v14  ;;  %v2001_v63 = vadd.f32 %v3989_v60, %v1720_v23 }
 0x19f   :  { %v2096_v7 = vpop.f32.mrf.mxu2 }
 0x1a0   :  { %v2116_v11 = vpop.f32.mrf.mxu3  ;;  %v2280_v35 = vadd.f32 %v2096_v7, %v1999_v31  ;;  %v2282_v7 = vadd.f32 %v2136_v13, %v2001_v63  ;;  %v2005_v31 = vadd.f32 %v3996_v50, %v1724_v43 }
 0x1a1   :  { %v2281_v4 = vadd.f32 %v2116_v11, %v2000_v55 }
 0x1a3   :  { %v4019_v16 = vpop.f32.mrf.mxu0  ;;  %v2236_v17 = vpop.f32.mrf.mxu1 }
 0x1a4   :  { %v2287_v48 = vadd.f32 %v2236_v17, %v2006_v41  ;;  %v2630_v17 = vld.sshfl [vmem:[#allocation1 + $0x10] sm:$0xff pattern:$0x75316420]  ;;  %v2286_v36 = vadd.f32 %v4019_v16, %v2005_v31 }
 0x1a7   :  { %v2176_v29 = vpop.f32.mrf.mxu2 }
 0x1a8   :  { %v4023_v34 = vpop.f32.mrf.mxu3  ;;  %v2284_v51 = vadd.f32 %v2176_v29, %v2003_v53  ;;  %v2862_v53 = vld [vmem:[%s4088_s4] sm:$0xff] }
 0x1ab   :  { %v2357_v37 = vpop.f32.mrf.mxu0  ;;  %v2377_v22 = vpop.f32.mrf.mxu1 }
 0x1ac   :  { %v2560_v40 = vadd.f32 %v2357_v37, %v2279_v28  ;;  %v2561_v45 = vadd.f32 %v2377_v22, %v2280_v35  ;;  %v2285_v37 = vadd.f32 %v4023_v34, %v2004_v12  ;;  %v2008_v34 = vadd.f32 %v4004_v57, %v3981_v46 }
 0x1ae   :  { %v2577_v8 = vadd.f32 %v4025_v39, %v2560_v40  ;;  %v2578_v30 = vadd.f32 %v4025_v39, %v2561_v45 }
 0x1af   :  { %v2256_v44 = vpop.f32.mrf.mxu2 }
 0x1b0   :  { %v2588_v10 = vmax.f32 %v2577_v8, 0.0  ;;  %v4033_v54 = vpop.f32.mrf.mxu3  ;;  %v2589_v56 = vmax.f32 %v2578_v30, 0.0  ;;  %v2288_v24 = vadd.f32 %v2256_v44, %v2007_v38 }
 0x1b1   :  { %v2289_v16 = vadd.f32 %v4033_v54, %v2008_v34 }
 0x1b2   :  { %2658 = vmatmul.f32.vlgmr.msra.gmra.mxu3 %v2588_v10  ;;  %2678 = vmatmul.f32.vlgmr.msrb.gmra.mxu0 %v2589_v56 }
 0x1b3   :  { %v2437_v20 = vpop.f32.mrf.mxu0  ;;  %2817 = vmatpush.xpose.msra.mxu3 %v2628_v52  ;;  %v2457_v42 = vpop.f32.mrf.mxu1  ;;  %2837 = vmatpush.xpose.msrb.mxu0 %v2629_v59 }
 0x1b4   :  { %v2564_v3 = vadd.f32 %v2437_v20, %v2283_v61  ;;  %v2565_v9 = vadd.f32 %v2457_v42, %v2284_v51 }
 0x1b6   :  { %v2581_v0 = vadd.f32 %v4025_v39, %v2564_v3  ;;  %v2582_v27 = vadd.f32 %v4025_v39, %v2565_v9 }
 0x1b7   :  { %v2397_v19 = vpop.f32.mrf.mxu2 }
 0x1b8   :  { %v2592_v15 = vmax.f32 %v2581_v0, 0.0  ;;  %v2593_v58 = vmax.f32 %v2582_v27, 0.0  ;;  %v2562_v21 = vadd.f32 %v2397_v19, %v2281_v4  ;;  %v2417_v18 = vpop.f32.mrf.mxu3 }
 0x1b9   :  { %v2563_v60 = vadd.f32 %v2417_v18, %v2282_v7 }
 0x1ba   :  { %2738 = vmatmul.f32.vlgmr.msrb.gmra.mxu3 %v2592_v15  ;;  %v2579_v25 = vadd.f32 %v4025_v39, %v2562_v21  ;;  %2758 = vmatmul.f32.vlgmr.msra.gmra.mxu0 %v2593_v58  ;;  %v3394_v15 = vld [vmem:[%s4089_s5] ss:$0 sm:$0xff] }
 0x1bb   :  { %v2517_v32 = vpop.f32.mrf.mxu0  ;;  %v2580_v33 = vadd.f32 %v4025_v39, %v2563_v60  ;;  %v2537_v11 = vpop.f32.mrf.mxu1 }
 0x1bc   :  { %v2568_v13 = vadd.f32 %v2517_v32, %v2287_v48  ;;  %v2590_v2 = vmax.f32 %v2579_v25, 0.0  ;;  %v2569_v29 = vadd.f32 %v2537_v11, %v2288_v24  ;;  %v2952_v25 = vld [vmem:[%s4084_s0] sm:$0x3]  ;;  %v3465_v32 = vmov 1  }
 0x1bd   :  { %v2591_v28 = vmax.f32 %v2580_v33, 0.0  ;;  %3392 = vset.pattern.permute.xlu2 %v3465_v32 }
 0x1be   :  { %v2585_v35 = vadd.f32 %v4025_v39, %v2568_v13  ;;  %v2586_v40 = vadd.f32 %v4025_v39, %v2569_v29  ;;  %2698 = vmatmul.f32.vlgmr.msrb.gmra.mxu1 %v2590_v2 }
 0x1bf   :  { %2718 = vmatmul.f32.vlgmr.msrb.gmra.mxu2 %v2591_v28  ;;  %v2477_v22 = vpop.f32.mrf.mxu2  ;;  %2857 = vmatpush.xpose.msrb.mxu1 %v2630_v17  ;;  %v2938_v17 = vlaneseq }
 0x1c0   :  { %v2596_v47 = vmax.f32 %v2585_v35, 0.0  ;;  %v2597_v26 = vmax.f32 %v2586_v40, 0.0  ;;  %v2566_v49 = vadd.f32 %v2477_v22, %v2285_v37  ;;  %v2497_v45 = vpop.f32.mrf.mxu3  ;;  %2917 = vmatpush.msrb.mxu2 %v2862_v53 }
 0x1c1   :  { %v2567_v6 = vadd.f32 %v2497_v45, %v2286_v36  ;;  %v2939_v31 = vand.u32 127, %v2938_v17 }
 0x1c2   :  { %2818 = vmatmul.f32.vlgmr.msra.gmra.mxu3 %v2596_v47  ;;  %v2583_v50 = vadd.f32 %v4025_v39, %v2566_v49  ;;  %2838 = vmatmul.f32.vlgmr.msrb.gmra.mxu0 %v2597_v26 }
 0x1c3   :  { %v2584_v8 = vadd.f32 %v4025_v39, %v2567_v6  ;;  %vm2940_vm12 = vcmp.eq.s32.totalorder %v2939_v31, 0 }
 0x1c4   :  { %v2594_v5 = vmax.f32 %v2583_v50, 0.0 }
 0x1c5   :  { %v2595_v30 = vmax.f32 %v2584_v8, 0.0 }
 0x1c6   :  { %2778 = vmatmul.f32.vlgmr.msra.gmra.mxu1 %v2594_v5 }
 0x1c7   :  { %2798 = vmatmul.f32.vlgmr.msra.gmra.mxu2 %v2595_v30  ;;  %v2557_v14 = vpop.f32.mrf.mxu2 }
 0x1c8   :  { %v2570_v44 = vadd.f32 %v2557_v14, %v2289_v16 }
 0x1ca   :  { %v2587_v10 = vadd.f32 %v4025_v39, %v2570_v44 }
 0x1cc   :  { %v2598_v52 = vmax.f32 %v2587_v10, 0.0 }
 0x1ce   :  { %2858 = vmatmul.f32.vlgmr.msrb.gmra.mxu1 %v2598_v52 }
 0x22f   :  { %v2679_v59 = vpop.f32.mrf.mxu0 }
 0x235   :  { %v2659_v56 = vpop.f32.mrf.mxu3 }
 0x236   :  { %v2680_v57 = vadd.f32 %v2679_v59, %v2659_v56 }
 0x237   :  { %v2759_v23 = vpop.f32.mrf.mxu0 }
 0x23b   :  { %v2699_v46 = vpop.f32.mrf.mxu1 }
 0x23c   :  { %v2700_v61 = vadd.f32 %v2699_v46, %v2680_v57 }
 0x23d   :  { %v2739_v51 = vpop.f32.mrf.mxu3 }
 0x23f   :  { %v2839_v1 = vpop.f32.mrf.mxu0 }
 0x242   :  { %v2719_v54 = vpop.f32.mrf.mxu2 }
 0x243   :  { %v2720_v20 = vadd.f32 %v2719_v54, %v2700_v61  ;;  %v2779_v42 = vpop.f32.mrf.mxu1 }
 0x245   :  { %v2740_v3 = vadd.f32 %v2739_v51, %v2720_v20  ;;  %v2819_v63 = vpop.f32.mrf.mxu3 }
 0x247   :  { %v2760_v55 = vadd.f32 %v2759_v23, %v2740_v3 }
 0x249   :  { %v2780_v39 = vadd.f32 %v2779_v42, %v2760_v55 }
 0x24a   :  { %v2799_v9 = vpop.f32.mrf.mxu2 }
 0x24b   :  { %v2800_v62 = vadd.f32 %v2799_v9, %v2780_v39  ;;  %v2859_v27 = vpop.f32.mrf.mxu1 }
 0x24d   :  { %v2820_v0 = vadd.f32 %v2819_v63, %v2800_v62 }
 0x24f   :  { %v2840_v4 = vadd.f32 %v2839_v1, %v2820_v0 }
 0x251   :  { %v2860_v41 = vadd.f32 %v2859_v27, %v2840_v4 }
 0x253   :  { %2867 = vxpose.xlu1.b32.start.end [1/1] (short) (narrow) %v2860_v41, 8 }
 0x2a6   :  { %3393 = vset.pattern.permute.xlu1 %v3465_v32 }
 0x2f7   :  { %v2883_v7 = vpop.trf.xlu1 }
 0x2f8   :  { %3106 = vmatmul.msk.f32.vlgmr.msrb.gmra.mxu2 %vm110_vm1, %v2883_v7 }
 0x37b   :  { %v2919_v19 = vpop.f32.mrf.mxu2 }
 0x37c   :  { %v2920_v38 = vadd.f32 %v3394_v15, %v2919_v19 }
 0x37e   :  { %v2923_v58 = vsel %vm2922_vm10, %v2920_v38, -inf }
 0x37f   :  { %2924 = vmax.xlane.f32.xlu2 %v2923_v58 }
 0x3f2   :  { %v2925_v21 = vpop.xlane.xlu2 %2924 }
 0x3f3   :  { %v2926_v18 = vsub.f32 %v2920_v38, %v2925_v21 }
 0x3f5   :  { %v2927_v48 = vmul.f32 1.442695, %v2926_v18 }
 0x3f7   :  { %3395 = vpow2.f32 %v2927_v48 }
 0x3fd   :  { %v3396_v60 = vpop.eup %3395 }
 0x3fe   :  { %v2929_v24 = vsel %vm2922_vm10, %v3396_v60, 0.0 }
 0x3ff   :  { %2930 = vadd.xlane.f32.xlu0 %v2929_v24 }
 0x413   :  { %2956 = vperm.xlu0 %3391, %v2952_v25  }
 0x472   :  { %v2931_v43 = vpop.xlane.xlu0 %2930 }
 0x473   :  { %3397 = vrcp.f32 %v2931_v43 }
 0x479   :  { %v3398_v33 = vpop.eup %3397 }
 0x47a   :  { %v2933_v13 = vmul.f32 %v3398_v33, %v3396_v60 }
 0x47c   :  { %v2936_v11 = vsub.f32 2.0, %v2933_v13  ;;  %v2934_v12 = vadd.f32 1.0, %v2933_v13  ;;  %2968 = vst.msk [vmem:[#allocation2] sm:$0x3] %vm2967_vm11, %v2933_v13 }
 0x47d   :  { %2985 = dma.vmem_to_hbm [thread:$0]  %s2981_s28, 32, %s2983_s26, [#allocation3]  }
 0x47e   :  { %v2937_v2 = vmul.f32 0.5, %v2936_v11  ;;  %v2935_v29 = vmul.f32 0.5, %v2934_v12 }
 0x480   :  { %2943 = vperm.xlu2 %3392, %v2937_v2   ;;  %2948 = vperm.xlu1 %3393, %v2935_v29  }
 0x485   :  { %v2957_v47 = vpop.permute.xlu0 %2956 }
 0x4da   :  { %v2944_v28 = vpop.permute.xlu2 %2943 }
 0x4f2   :  { %v2949_v35 = vpop.permute.xlu1 %2948 }
 0x4f3   :  { %v2951_v37 = vsel %vm2940_vm12, %v2944_v28, %v2949_v35 }
 0x4f4   :  { %v2953_v40 = vsub.f32 1.0, %v2951_v37 }
 0x4f6   :  { %v2960_v36 = vrot.slane %v2953_v40, 2 }
 0x4f8   :  { %v2962_v22 = vmul.f32 %v2960_v36, %v2957_v47 }
 0x4fa   :  { %v2963_v26 = vsub.f32 0.0, %v2962_v22 }
 0x4fc   :  { %v2964_v49 = vmul.f32 1.442695, %v2963_v26 }
 0x4fe   :  { %3399 = vpow2.f32 %v2964_v49 }
 0x504   :  { %v3400_v45 = vpop.eup %3399 }
 0x505   :  { %v2966_v6 = vmul.f32 %v3400_v45, %v2933_v13 }
 0x507   :  { %v2969_v50 = vsel %vm2967_vm11, %v2966_v6, 0.0 }
 0x508   :  { %2970 = vadd.xlane.f32.xlu2 %v2969_v50 }
 0x57b   :  { %v2971_v8 = vpop.xlane.xlu2 %2970 }
 0x57c   :  { %3401 = vrcp.f32 %v2971_v8 }
 0x582   :  { %v3402_v34 = vpop.eup %3401 }
 0x583   :  { %v2973_v5 = vmul.f32 %v3402_v34, %v2966_v6 }
 0x585   :  { %2974 = vst.msk [vmem:[#allocation4] sm:$0x3] %vm2967_vm11, %v2973_v5 }
 0x586   :  { %2996 = dma.vmem_to_hbm [thread:$0]  %s2992_s30, 32, %s2994_s3, [#allocation5]  }
 0x587   :  { %3451 = dma.done.wait [#allocation3], 32  }
 0x588   :  { %3452 = vsyncadd [#allocation3], 4294967264 }
 0x589   :  { %3453 = dma.done.wait [#allocation5], 32  }
 0x58a   :  { %3454 = vsyncadd [#allocation5], 4294967264 }
 0x58b   :  { %3005 = vsyncpa [#allocation3], 1 }
 0x58c   :  { %3006 = vsyncpa [#allocation5], 1 }

</bundles_post_ra>
